<compile_context>
chip_gen: v6e
topology: v6e:2x2x1
jax: 0.10.0
libtpu: 0.0.40
codegen_flags: <defaults>
</compile_context>

<pallas_src>
import functools

import jax
import jax.numpy as jnp
from jax.experimental import pallas as pl
from jax.experimental.pallas import tpu as pltpu


def _round_up(x, m):
    return ((x + m - 1) // m) * m


def _vmem_limit(nbytes):
    # explicit scoped-VMEM limit (v5e default is only 16 MiB); capped well
    # under v7x's 64 MiB physical VMEM.
    return int(min(max(2 * nbytes + (1 << 20), 16 << 20), 48 << 20))


# ----------------------- GCN layer kernels (row-tiled) -----------------------

def _gcn_core(a, h, w, ah_first):
    # a: (bn, N) bf16, h: (N, d_in) bf16, w: (d_in, d_out) bf16 -> (bn, d_out) f32
    if ah_first:                       # cheaper when d_in < d_out
        ah = jnp.dot(a, h, preferred_element_type=jnp.float32)
        return jnp.dot(ah.astype(jnp.bfloat16), w, preferred_element_type=jnp.float32)
    xw = jnp.dot(h, w, preferred_element_type=jnp.float32)
    return jnp.dot(a, xw.astype(jnp.bfloat16), preferred_element_type=jnp.float32)


def _gcn_layer_kernel(a_ref, h_ref, w_ref, b_ref, o_ref, *, ah_first, apply_relu):
    out = _gcn_core(a_ref[...], h_ref[...], w_ref[...], ah_first) + b_ref[...]
    if apply_relu:
        out = jnp.maximum(out, 0.0)    # relu in fp32
    # dropout1: identity in eval mode
    o_ref[...] = out


def _gcn_last_kernel(a_ref, h_ref, w_ref, b_ref, pw_ref, pb_ref,
                     h1_ref, g_ref, *, ah_first):
    out = _gcn_core(a_ref[...], h_ref[...], w_ref[...], ah_first) + b_ref[...]
    h1_ref[...] = out
    # g_score = h1 @ proj_w + proj_b as a lane reduction (tiny (bn,1) store).
    g_ref[...] = jnp.sum(out * pw_ref[...], axis=1, keepdims=True) + pb_ref[...]


def _gcn_block_size(n, row_block):
    row_block = _round_up(row_block, 8)
    return n if n <= row_block else row_block


def gcn_layer(a_bf16, h, w, b, *, apply_relu, row_block=256):
    n = a_bf16.shape[0]
    d_in, d_out = w.shape
    bn = _gcn_block_size(n, row_block)
    grid = (pl.cdiv(n, bn),)
    ah_first = d_in < d_out

    h_bf16 = h.astype(jnp.bfloat16)
    w_bf16 = w.astype(jnp.bfloat16)
    b_f32 = b.reshape(1, -1).astype(jnp.float32)

    if ah_first:
        flops = 2 * n * n * d_in + 2 * n * d_in * d_out
    else:
        flops = 2 * grid[0] * n * d_in * d_out + 2 * n * n * d_out
    bytes_accessed = n * n * 2 + n * d_in * 2 + d_in * d_out * 2 + n * d_out * 4
    vmem_need = (2 * bn * n * 2 + 2 * n * d_in * 2 + 2 * bn * d_out * 4
                 + d_in * d_out * 2 + (1 << 20))

    return pl.pallas_call(
        functools.partial(_gcn_layer_kernel, ah_first=ah_first, apply_relu=apply_relu),
        out_shape=jax.ShapeDtypeStruct((n, d_out), jnp.float32),
        grid=grid,
        in_specs=[
            pl.BlockSpec((bn, n), lambda i: (i, 0)),        # A row slab (double-buffered)
            pl.BlockSpec((n, d_in), lambda i: (0, 0)),      # full h, resident
            pl.BlockSpec((d_in, d_out), lambda i: (0, 0)),
            pl.BlockSpec((1, d_out), lambda i: (0, 0)),
        ],
        out_specs=pl.BlockSpec((bn, d_out), lambda i: (i, 0)),
        compiler_params=pltpu.CompilerParams(
            dimension_semantics=("parallel",),
            vmem_limit_bytes=_vmem_limit(vmem_need)),
        cost_estimate=pl.CostEstimate(flops=int(flops), transcendentals=0,
                                      bytes_accessed=int(bytes_accessed)),
    )(a_bf16, h_bf16, w_bf16, b_f32)


def gcn_last_layer(a_bf16, h, w, b, proj_w, proj_b, *, row_block=256):
    n = a_bf16.shape[0]
    d_in, d_out = w.shape
    bn = _gcn_block_size(n, row_block)
    grid = (pl.cdiv(n, bn),)
    ah_first = d_in < d_out

    h_bf16 = h.astype(jnp.bfloat16)
    w_bf16 = w.astype(jnp.bfloat16)
    b_f32 = b.reshape(1, -1).astype(jnp.float32)
    pw = proj_w.reshape(1, -1).astype(jnp.float32)
    pb = proj_b.reshape(1, 1).astype(jnp.float32)

    if ah_first:
        flops = 2 * n * n * d_in + 2 * n * d_in * d_out
    else:
        flops = 2 * grid[0] * n * d_in * d_out + 2 * n * n * d_out
    flops += 2 * n * d_out
    bytes_accessed = n * n * 2 + n * d_in * 2 + d_in * d_out * 2 + n * d_out * 4 + n * 4
    vmem_need = (2 * bn * n * 2 + 2 * n * d_in * 2 + 2 * bn * d_out * 4
                 + d_in * d_out * 2 + (1 << 20))

    return pl.pallas_call(
        functools.partial(_gcn_last_kernel, ah_first=ah_first),
        out_shape=(jax.ShapeDtypeStruct((n, d_out), jnp.float32),
                   jax.ShapeDtypeStruct((n, 1), jnp.float32)),
        grid=grid,
        in_specs=[
            pl.BlockSpec((bn, n), lambda i: (i, 0)),
            pl.BlockSpec((n, d_in), lambda i: (0, 0)),
            pl.BlockSpec((d_in, d_out), lambda i: (0, 0)),
            pl.BlockSpec((1, d_out), lambda i: (0, 0)),
            pl.BlockSpec((1, d_out), lambda i: (0, 0)),
            pl.BlockSpec((1, 1), lambda i: (0, 0)),
        ],
        out_specs=(pl.BlockSpec((bn, d_out), lambda i: (i, 0)),
                   pl.BlockSpec((bn, 1), lambda i: (i, 0))),
        compiler_params=pltpu.CompilerParams(
            dimension_semantics=("parallel",),
            vmem_limit_bytes=_vmem_limit(vmem_need)),
        cost_estimate=pl.CostEstimate(flops=int(flops), transcendentals=0,
                                      bytes_accessed=int(bytes_accessed)),
    )(a_bf16, h_bf16, w_bf16, b_f32, pw, pb)


# ------------- tail kernel: conv1d -> relu -> conv1d_2 -> cat+linear ---------

def _tail_kernel(h1s_ref, gs_ref, w1_ref, b1_ref, w2_ref, b2_ref,
                 wa_ref, wb_ref, lb_ref, o_ref, pad_ref, *, ksize, pad, n, top):
    c_out = w1_ref.shape[2]
    h1s = h1s_ref[...]                           # h1[sorted_idx], fp32
    xs = gs_ref[...] * h1s                       # sorted_x = g_sorted * h1[sorted_idx]

    # Zero ONLY the halo rows of the padded scratch; rows [top, top+n) are
    # always overwritten by each conv.  Rows 0..top-1 is a sublane-aligned store.
    pad_ref[0:top, :] = jnp.zeros((top, pad_ref.shape[1]), dtype=pad_ref.dtype)
    tail_rows = pad_ref.shape[0] - (top + n)
    if tail_rows > 0:
        pad_ref[top + n:, :] = jnp.zeros((tail_rows, pad_ref.shape[1]),
                                         dtype=pad_ref.dtype)

    def conv1d(inp, w_ref, b_ref):
        # tap-sum conv: out[m] = b + sum_t padded[m + t - pad] @ W[t]
        # (no (N, k*C) im2col concatenate; each tap is a static row-shifted slice)
        pad_ref[top:top + n, :] = inp            # sublane-aligned payload (top = 8)
        acc = jnp.zeros((n, c_out), jnp.float32)
        for t in range(ksize):
            sl = pad_ref[top - pad + t: top - pad + t + n, :]
            acc = acc + jnp.dot(sl.astype(jnp.bfloat16), w_ref[t],
                                preferred_element_type=jnp.float32)
        return acc + b_ref[...]

    y = jnp.maximum(conv1d(xs, w1_ref, b1_ref), 0.0)   # relu(conv1d(.))
    # dropout2: identity in eval mode
    z = conv1d(y, w2_ref, b2_ref)                      # conv1d_2(.)

    # lin(cat([h1, h2])) evaluated in SORTED row order:
    #   out_sorted = h1_sorted @ Wa + z @ Wb + b   (single un-permute happens outside)
    o_ref[...] = (jnp.dot(h1s.astype(jnp.bfloat16), wa_ref[...],
                          preferred_element_type=jnp.float32)
                  + jnp.dot(z.astype(jnp.bfloat16), wb_ref[...],
                            preferred_element_type=jnp.float32)
                  + lb_ref[...])


def tail_fused(h1_sorted, g_sorted, w1, b1, w2, b2, wa, wb, lb, ksize):
    n, c = h1_sorted.shape
    pad = (ksize - 1) // 2
    top = 8                                     # sublane-aligned payload offset
    pad_rows = _round_up(top + n + pad, 8)

    inputs = (h1_sorted.astype(jnp.float32), g_sorted.astype(jnp.float32),
              w1.astype(jnp.bfloat16), b1.reshape(1, -1).astype(jnp.float32),
              w2.astype(jnp.bfloat16), b2.reshape(1, -1).astype(jnp.float32),
              wa.astype(jnp.bfloat16), wb.astype(jnp.bfloat16),
              lb.reshape(1, -1).astype(jnp.float32))

    flops = 2 * 2 * ksize * n * c * c + 2 * 2 * n * c * c
    bytes_accessed = (2 * n * c * 4 + n * 4 + 2 * ksize * c * c * 2
                      + 2 * c * c * 2 + n * c * 4)
    vmem_need = 4 * n * c * 4 + 2 * ksize * c * c * 2 + pad_rows * c * 4 + (1 << 20)

    return pl.pallas_call(
        functools.partial(_tail_kernel, ksize=ksize, pad=pad, n=n, top=top),
        out_shape=jax.ShapeDtypeStruct((n, c), jnp.float32),
        in_specs=[pl.BlockSpec(memory_space=pltpu.MemorySpace.VMEM)] * len(inputs),
        out_specs=pl.BlockSpec(memory_space=pltpu.MemorySpace.VMEM),
        scratch_shapes=[pltpu.VMEM((pad_rows, c), jnp.float32)],
        compiler_params=pltpu.CompilerParams(vmem_limit_bytes=_vmem_limit(vmem_need)),
        cost_estimate=pl.CostEstimate(flops=int(flops), transcendentals=0,
                                      bytes_accessed=int(bytes_accessed)),
    )(*inputs)


# ------------------------------- glue ----------------------------------------

def build_gcn_adj(edge_index, num_nodes):
    """Dense symmetric-normalized adjacency with self loops (GCNConv norm).

    Note: self loops are added unconditionally; if edge_index already contains
    self loops / duplicate edges their multiplicity accumulates (differs from
    PyG's remove-and-re-add gcn_norm in that corner case).
    """
    src, dst = edge_index[0], edge_index[1]
    a = jnp.zeros((num_nodes, num_nodes), jnp.float32)
    a = a.at[dst, src].add(1.0)          # message src -> dst  => A[dst, src]
    a = a + jnp.eye(num_nodes, dtype=jnp.float32)
    deg = a.sum(axis=1)
    dinv = jnp.where(deg > 0, 1.0 / jnp.sqrt(deg), 0.0)
    return dinv[:, None] * a * dinv[None, :]


@functools.partial(jax.jit, static_argnames=("num_nodes", "kernel_size", "row_block"))
def nlgnn2_forward(params, x, edge_index, num_nodes, kernel_size, row_block=256):
    # dense symmetric-normalized adjacency, fed to the MXU in bf16
    # (bf16 A loses ~3 decimal digits on 1/sqrt(d_i d_j); acceptable here).
    a_bf16 = build_gcn_adj(edge_index, num_nodes).astype(jnp.bfloat16)

    n_layers = len(params["gcn_w"])
    h = x
    for i in range(n_layers - 1):
        h = gcn_layer(a_bf16, h, params["gcn_w"][i], params["gcn_b"][i],
                      apply_relu=True, row_block=row_block)
        # dropout1: identity in eval mode
    h1, g = gcn_last_layer(a_bf16, h, params["gcn_w"][-1], params["gcn_b"][-1],
                           params["proj_w"], params["proj_b"], row_block=row_block)

    # sort + O(N*C) row gathers in XLA glue (replaces the one-hot P / Pinv matmuls).
    # (jnp.argsort tie-breaking may differ from torch.sort for duplicate scores)
    order = jnp.argsort(g[:, 0])                 # sorted_idx
    h1_sorted = jnp.take(h1, order, axis=0)
    g_sorted = jnp.take(g, order, axis=0)        # (N, 1) g_score_sorted

    c = params["gcn_w"][-1].shape[1]
    wa = params["lin_w"][:c, :]                  # applied to h1
    wb = params["lin_w"][c:, :]                  # applied to h2

    out_sorted = tail_fused(h1_sorted, g_sorted,
                            params["conv1_w"], params["conv1_b"],
                            params["conv2_w"], params["conv2_b"],
                            wa, wb, params["lin_b"], kernel_size)

    # TODO(synk): the PyTorch code does torch.cat([h1 (N,C), sorted_x[inverse_idx]
    # (N,1,C)], dim=1) which would raise; we implement the intended (N,C)
    # un-permutation of the conv output.
    inverse_idx = jnp.argsort(order)
    return jnp.take(out_sorted, inverse_idx, axis=0)


def init_params(key, n_gnn_layers, in_dim, hid_dim, out_dim, kernel_size):
    keys = jax.random.split(key, 2 * n_gnn_layers + 8)
    ki = 0

    gcn_w, gcn_b = [], []
    d_in = in_dim
    for i in range(n_gnn_layers):
        d_out = out_dim if i == n_gnn_layers - 1 else hid_dim
        gcn_w.append(0.1 * jax.random.normal(keys[ki], (d_in, d_out), jnp.float32)); ki += 1
        gcn_b.append(0.1 * jax.random.normal(keys[ki], (d_out,), jnp.float32)); ki += 1
        d_in = d_out

    # nn.Linear(out_dim, 1): torch weight (1, out_dim) -> stored transposed (out_dim, 1)
    proj_w = 0.1 * jax.random.normal(keys[ki], (out_dim, 1), jnp.float32); ki += 1
    proj_b = 0.1 * jax.random.normal(keys[ki], (1,), jnp.float32); ki += 1

    # nn.Conv1d weight (C_out, C_in, k) -> kernel layout (k, C_in, C_out)
    c1 = 0.1 * jax.random.normal(keys[ki], (out_dim, out_dim, kernel_size), jnp.float32); ki += 1
    conv1_b = 0.1 * jax.random.normal(keys[ki], (out_dim,), jnp.float32); ki += 1
    c2 = 0.1 * jax.random.normal(keys[ki], (out_dim, out_dim, kernel_size), jnp.float32); ki += 1
    conv2_b = 0.1 * jax.random.normal(keys[ki], (out_dim,), jnp.float32); ki += 1
    conv1_w = jnp.transpose(c1, (2, 1, 0))
    conv2_w = jnp.transpose(c2, (2, 1, 0))

    # nn.Linear(2*out_dim, out_dim): torch weight (out, 2*out) -> transposed
    lw = 0.1 * jax.random.normal(keys[ki], (out_dim, 2 * out_dim), jnp.float32); ki += 1
    lin_b = 0.1 * jax.random.normal(keys[ki], (out_dim,), jnp.float32); ki += 1
    lin_w = lw.T

    return dict(gcn_w=gcn_w, gcn_b=gcn_b,
                proj_w=proj_w, proj_b=proj_b,
                conv1_w=conv1_w, conv1_b=conv1_b,
                conv2_w=conv2_w, conv2_b=conv2_b,
                lin_w=lin_w, lin_b=lin_b)


if __name__ == "__main__":
    N, IN_DIM, HID_DIM, OUT_DIM, KSIZE = 64, 16, 32, 32, 5
    N_GNN_LAYERS = 3

    key = jax.random.PRNGKey(0)
    k_x, k_p = jax.random.split(key)

    x = jax.random.normal(k_x, (N, IN_DIM), jnp.float32)

    # symmetric ring graph: edge_index shape (2, 2N), row0 = src, row1 = dst
    src = jnp.arange(N, dtype=jnp.int32)
    dst = (src + 1) % N
    edge_index = jnp.stack(
        [jnp.concatenate([src, dst]), jnp.concatenate([dst, src])], axis=0)

    params = init_params(k_p, N_GNN_LAYERS, IN_DIM, HID_DIM, OUT_DIM, KSIZE)

    # row_block=32 so the GCN layer grid has 2 row blocks even at this toy N
    # (exercises the tiled/parallel path; defaults to 256 at real sizes).
    out = nlgnn2_forward(params, x, edge_index, N, KSIZE, row_block=32)
    out = jax.block_until_ready(out)
    assert out.shape == (N, OUT_DIM)
    assert jnp.all(jnp.isfinite(out))
    print("KERNEL_OK")
</pallas_src>

<mosaic_0001>
module attributes {stable_mosaic.version = 11 : i64} {
  func.func private @main(%arg0: i32) attributes {dimension_semantics = [#tpu.dimension_semantics<core_parallel>], iteration_bounds = array<i64: 2>, tpu.core_type = #tpu.core_type<sc_scalar_subcore>, window_params = []} {
    return
  }
}

module attributes {stable_mosaic.version = 11 : i64} {
  func.func private @main(%arg0: i32) attributes {dimension_semantics = [#tpu.dimension_semantics<core_parallel>], iteration_bounds = array<i64: 2>, tpu.core_type = #tpu.core_type<sc_scalar_subcore>, window_params = []} {
    return
  }
}

module attributes {stable_mosaic.version = 11 : i64} {
  func.func @_gcn_layer_kernel(%arg0: i32, %arg1: memref<32x64xbf16, #tpu.memory_space<vmem>>, %arg2: memref<64x16xbf16, #tpu.memory_space<vmem>>, %arg3: memref<16x32xbf16, #tpu.memory_space<vmem>>, %arg4: memref<1x32xf32, #tpu.memory_space<vmem>>, %arg5: memref<32x32xf32, #tpu.memory_space<vmem>>) attributes {dimension_semantics = [#tpu.dimension_semantics<parallel>], iteration_bounds = array<i64: 2>, scalar_prefetch = 0 : i64, scratch_operands = 0 : i64, tpu.core_type = #tpu.core_type<tc>, window_params = [{transform_indices = @transform_0, window_bounds = array<i64: 32, 64>}, {pipeline_mode = #tpu.pipeline_mode<synchronous>, transform_indices = @transform_1, window_bounds = array<i64: 64, 16>}, {pipeline_mode = #tpu.pipeline_mode<synchronous>, transform_indices = @transform_2, window_bounds = array<i64: 16, 32>}, {pipeline_mode = #tpu.pipeline_mode<synchronous>, transform_indices = @transform_3, window_bounds = array<i64: 1, 32>}, {transform_indices = @transform_4, window_bounds = array<i64: 32, 32>}]} {
    %c0 = arith.constant 0 : index
    %c0_0 = arith.constant 0 : index
    %0 = vector.load %arg1[%c0, %c0_0] : memref<32x64xbf16, #tpu.memory_space<vmem>>, vector<32x64xbf16>
    %c0_1 = arith.constant 0 : index
    %c0_2 = arith.constant 0 : index
    %1 = vector.load %arg2[%c0_1, %c0_2] : memref<64x16xbf16, #tpu.memory_space<vmem>>, vector<64x16xbf16>
    %c0_3 = arith.constant 0 : index
    %c0_4 = arith.constant 0 : index
    %2 = vector.load %arg3[%c0_3, %c0_4] : memref<16x32xbf16, #tpu.memory_space<vmem>>, vector<16x32xbf16>
    %cst = arith.constant dense<0.000000e+00> : vector<32x16xf32>
    %3 = tpu.matmul %0, %1, %cst {dimension_numbers = #tpu.dot_dimension_numbers<[1], [0], [0], [1], [0, 0, 1, 1], [], []>} : vector<32x64xbf16>, vector<64x16xbf16>, vector<32x16xf32> -> vector<32x16xf32>
    %4 = arith.truncf %3 : vector<32x16xf32> to vector<32x16xbf16>
    %cst_5 = arith.constant dense<0.000000e+00> : vector<32x32xf32>
    %5 = tpu.matmul %4, %2, %cst_5 {dimension_numbers = #tpu.dot_dimension_numbers<[1], [0], [0], [1], [0, 0, 1, 1], [], []>} : vector<32x16xbf16>, vector<16x32xbf16>, vector<32x32xf32> -> vector<32x32xf32>
    %c0_6 = arith.constant 0 : index
    %c0_7 = arith.constant 0 : index
    %6 = vector.load %arg4[%c0_6, %c0_7] : memref<1x32xf32, #tpu.memory_space<vmem>>, vector<1x32xf32>
    %7 = vector.broadcast %6 : vector<1x32xf32> to vector<32x32xf32>
    %8 = arith.addf %5, %7 : vector<32x32xf32>
    %cst_8 = arith.constant 0.000000e+00 : f32
    %9 = vector.broadcast %cst_8 : f32 to vector<32x32xf32>
    %10 = arith.maximumf %8, %9 : vector<32x32xf32>
    %c0_9 = arith.constant 0 : index
    %c0_10 = arith.constant 0 : index
    %11 = vector.load %arg5[%c0_9, %c0_10] : memref<32x32xf32, #tpu.memory_space<vmem>>, vector<32x32xf32>
    tpu.vector_store %arg5[%c0_9, %c0_10], %10 {strides = array<i32>} : memref<32x32xf32, #tpu.memory_space<vmem>>, vector<32x32xf32>,
    return
  }
  func.func @transform_0(%arg0: i32) -> (i32, i32) {
    %c0_i32 = arith.constant 0 : i32
    %c0_i32_0 = arith.constant 0 : i32
    return %arg0, %c0_i32 : i32, i32
  }
  func.func @transform_1(%arg0: i32) -> (i32, i32) {
    %c0_i32 = arith.constant 0 : i32
    %c0_i32_0 = arith.constant 0 : i32
    %c0_i32_1 = arith.constant 0 : i32
    return %c0_i32, %c0_i32_0 : i32, i32
  }
  func.func @transform_2(%arg0: i32) -> (i32, i32) {
    %c0_i32 = arith.constant 0 : i32
    %c0_i32_0 = arith.constant 0 : i32
    %c0_i32_1 = arith.constant 0 : i32
    return %c0_i32, %c0_i32_0 : i32, i32
  }
  func.func @transform_3(%arg0: i32) -> (i32, i32) {
    %c0_i32 = arith.constant 0 : i32
    %c0_i32_0 = arith.constant 0 : i32
    %c0_i32_1 = arith.constant 0 : i32
    return %c0_i32, %c0_i32_0 : i32, i32
  }
  func.func @transform_4(%arg0: i32) -> (i32, i32) {
    %c0_i32 = arith.constant 0 : i32
    %c0_i32_0 = arith.constant 0 : i32
    return %arg0, %c0_i32 : i32, i32
  }
}

module attributes {stable_mosaic.version = 11 : i64} {
  func.func @_gcn_layer_kernel(%arg0: i32, %arg1: memref<32x64xbf16, #tpu.memory_space<vmem>>, %arg2: memref<64x32xbf16, #tpu.memory_space<vmem>>, %arg3: memref<32x32xbf16, #tpu.memory_space<vmem>>, %arg4: memref<1x32xf32, #tpu.memory_space<vmem>>, %arg5: memref<32x32xf32, #tpu.memory_space<vmem>>) attributes {dimension_semantics = [#tpu.dimension_semantics<parallel>], iteration_bounds = array<i64: 2>, scalar_prefetch = 0 : i64, scratch_operands = 0 : i64, tpu.core_type = #tpu.core_type<tc>, window_params = [{transform_indices = @transform_0, window_bounds = array<i64: 32, 64>}, {pipeline_mode = #tpu.pipeline_mode<synchronous>, transform_indices = @transform_1, window_bounds = array<i64: 64, 32>}, {pipeline_mode = #tpu.pipeline_mode<synchronous>, transform_indices = @transform_2, window_bounds = array<i64: 32, 32>}, {pipeline_mode = #tpu.pipeline_mode<synchronous>, transform_indices = @transform_3, window_bounds = array<i64: 1, 32>}, {transform_indices = @transform_4, window_bounds = array<i64: 32, 32>}]} {
    %c0 = arith.constant 0 : index
    %c0_0 = arith.constant 0 : index
    %0 = vector.load %arg1[%c0, %c0_0] : memref<32x64xbf16, #tpu.memory_space<vmem>>, vector<32x64xbf16>
    %c0_1 = arith.constant 0 : index
    %c0_2 = arith.constant 0 : index
    %1 = vector.load %arg2[%c0_1, %c0_2] : memref<64x32xbf16, #tpu.memory_space<vmem>>, vector<64x32xbf16>
    %c0_3 = arith.constant 0 : index
    %c0_4 = arith.constant 0 : index
    %2 = vector.load %arg3[%c0_3, %c0_4] : memref<32x32xbf16, #tpu.memory_space<vmem>>, vector<32x32xbf16>
    %cst = arith.constant dense<0.000000e+00> : vector<64x32xf32>
    %3 = tpu.matmul %1, %2, %cst {dimension_numbers = #tpu.dot_dimension_numbers<[1], [0], [0], [1], [0, 0, 1, 1], [], []>} : vector<64x32xbf16>, vector<32x32xbf16>, vector<64x32xf32> -> vector<64x32xf32>
    %4 = arith.truncf %3 : vector<64x32xf32> to vector<64x32xbf16>
    %cst_5 = arith.constant dense<0.000000e+00> : vector<32x32xf32>
    %5 = tpu.matmul %0, %4, %cst_5 {dimension_numbers = #tpu.dot_dimension_numbers<[1], [0], [0], [1], [0, 0, 1, 1], [], []>} : vector<32x64xbf16>, vector<64x32xbf16>, vector<32x32xf32> -> vector<32x32xf32>
    %c0_6 = arith.constant 0 : index
    %c0_7 = arith.constant 0 : index
    %6 = vector.load %arg4[%c0_6, %c0_7] : memref<1x32xf32, #tpu.memory_space<vmem>>, vector<1x32xf32>
    %7 = vector.broadcast %6 : vector<1x32xf32> to vector<32x32xf32>
    %8 = arith.addf %5, %7 : vector<32x32xf32>
    %cst_8 = arith.constant 0.000000e+00 : f32
    %9 = vector.broadcast %cst_8 : f32 to vector<32x32xf32>
    %10 = arith.maximumf %8, %9 : vector<32x32xf32>
    %c0_9 = arith.constant 0 : index
    %c0_10 = arith.constant 0 : index
    %11 = vector.load %arg5[%c0_9, %c0_10] : memref<32x32xf32, #tpu.memory_space<vmem>>, vector<32x32xf32>
    tpu.vector_store %arg5[%c0_9, %c0_10], %10 {strides = array<i32>} : memref<32x32xf32, #tpu.memory_space<vmem>>, vector<32x32xf32>,
    return
  }
  func.func @transform_0(%arg0: i32) -> (i32, i32) {
    %c0_i32 = arith.constant 0 : i32
    %c0_i32_0 = arith.constant 0 : i32
    return %arg0, %c0_i32 : i32, i32
  }
  func.func @transform_1(%arg0: i32) -> (i32, i32) {
    %c0_i32 = arith.constant 0 : i32
    %c0_i32_0 = arith.constant 0 : i32
    %c0_i32_1 = arith.constant 0 : i32
    return %c0_i32, %c0_i32_0 : i32, i32
  }
  func.func @transform_2(%arg0: i32) -> (i32, i32) {
    %c0_i32 = arith.constant 0 : i32
    %c0_i32_0 = arith.constant 0 : i32
    %c0_i32_1 = arith.constant 0 : i32
    return %c0_i32, %c0_i32_0 : i32, i32
  }
  func.func @transform_3(%arg0: i32) -> (i32, i32) {
    %c0_i32 = arith.constant 0 : i32
    %c0_i32_0 = arith.constant 0 : i32
    %c0_i32_1 = arith.constant 0 : i32
    return %c0_i32, %c0_i32_0 : i32, i32
  }
  func.func @transform_4(%arg0: i32) -> (i32, i32) {
    %c0_i32 = arith.constant 0 : i32
    %c0_i32_0 = arith.constant 0 : i32
    return %arg0, %c0_i32 : i32, i32
  }
}

module attributes {stable_mosaic.version = 11 : i64} {
  func.func @_gcn_last_kernel(%arg0: i32, %arg1: memref<32x64xbf16, #tpu.memory_space<vmem>>, %arg2: memref<64x32xbf16, #tpu.memory_space<vmem>>, %arg3: memref<32x32xbf16, #tpu.memory_space<vmem>>, %arg4: memref<1x32xf32, #tpu.memory_space<vmem>>, %arg5: memref<1x32xf32, #tpu.memory_space<vmem>>, %arg6: memref<1x1xf32, #tpu.memory_space<vmem>>, %arg7: memref<32x32xf32, #tpu.memory_space<vmem>>, %arg8: memref<32x1xf32, #tpu.memory_space<vmem>>) attributes {dimension_semantics = [#tpu.dimension_semantics<parallel>], iteration_bounds = array<i64: 2>, scalar_prefetch = 0 : i64, scratch_operands = 0 : i64, tpu.core_type = #tpu.core_type<tc>, window_params = [{transform_indices = @transform_0, window_bounds = array<i64: 32, 64>}, {pipeline_mode = #tpu.pipeline_mode<synchronous>, transform_indices = @transform_1, window_bounds = array<i64: 64, 32>}, {pipeline_mode = #tpu.pipeline_mode<synchronous>, transform_indices = @transform_2, window_bounds = array<i64: 32, 32>}, {pipeline_mode = #tpu.pipeline_mode<synchronous>, transform_indices = @transform_3, window_bounds = array<i64: 1, 32>}, {pipeline_mode = #tpu.pipeline_mode<synchronous>, transform_indices = @transform_4, window_bounds = array<i64: 1, 32>}, {pipeline_mode = #tpu.pipeline_mode<synchronous>, transform_indices = @transform_5, window_bounds = array<i64: 1, 1>}, {transform_indices = @transform_6, window_bounds = array<i64: 32, 32>}, {transform_indices = @transform_7, window_bounds = array<i64: 32, 1>}]} {
    %c0 = arith.constant 0 : index
    %c0_0 = arith.constant 0 : index
    %0 = vector.load %arg1[%c0, %c0_0] : memref<32x64xbf16, #tpu.memory_space<vmem>>, vector<32x64xbf16>
    %c0_1 = arith.constant 0 : index
    %c0_2 = arith.constant 0 : index
    %1 = vector.load %arg2[%c0_1, %c0_2] : memref<64x32xbf16, #tpu.memory_space<vmem>>, vector<64x32xbf16>
    %c0_3 = arith.constant 0 : index
    %c0_4 = arith.constant 0 : index
    %2 = vector.load %arg3[%c0_3, %c0_4] : memref<32x32xbf16, #tpu.memory_space<vmem>>, vector<32x32xbf16>
    %cst = arith.constant dense<0.000000e+00> : vector<64x32xf32>
    %3 = tpu.matmul %1, %2, %cst {dimension_numbers = #tpu.dot_dimension_numbers<[1], [0], [0], [1], [0, 0, 1, 1], [], []>} : vector<64x32xbf16>, vector<32x32xbf16>, vector<64x32xf32> -> vector<64x32xf32>
    %4 = arith.truncf %3 : vector<64x32xf32> to vector<64x32xbf16>
    %cst_5 = arith.constant dense<0.000000e+00> : vector<32x32xf32>
    %5 = tpu.matmul %0, %4, %cst_5 {dimension_numbers = #tpu.dot_dimension_numbers<[1], [0], [0], [1], [0, 0, 1, 1], [], []>} : vector<32x64xbf16>, vector<64x32xbf16>, vector<32x32xf32> -> vector<32x32xf32>
    %c0_6 = arith.constant 0 : index
    %c0_7 = arith.constant 0 : index
    %6 = vector.load %arg4[%c0_6, %c0_7] : memref<1x32xf32, #tpu.memory_space<vmem>>, vector<1x32xf32>
    %7 = vector.broadcast %6 : vector<1x32xf32> to vector<32x32xf32>
    %8 = arith.addf %5, %7 : vector<32x32xf32>
    %c0_8 = arith.constant 0 : index
    %c0_9 = arith.constant 0 : index
    %9 = vector.load %arg7[%c0_8, %c0_9] : memref<32x32xf32, #tpu.memory_space<vmem>>, vector<32x32xf32>
    tpu.vector_store %arg7[%c0_8, %c0_9], %8 {strides = array<i32>} : memref<32x32xf32, #tpu.memory_space<vmem>>, vector<32x32xf32>,
    %c0_10 = arith.constant 0 : index
    %c0_11 = arith.constant 0 : index
    %10 = vector.load %arg5[%c0_10, %c0_11] : memref<1x32xf32, #tpu.memory_space<vmem>>, vector<1x32xf32>
    %11 = vector.broadcast %10 : vector<1x32xf32> to vector<32x32xf32>
    %12 = arith.mulf %8, %11 : vector<32x32xf32>
    %cst_12 = arith.constant dense<0.000000e+00> : vector<32xf32>
    %13 = vector.multi_reduction <add>, %12, %cst_12 [1] : vector<32x32xf32> to vector<32xf32>
    %14 = vector.shape_cast %13 : vector<32xf32> to vector<32x1xf32>
    %c0_13 = arith.constant 0 : index
    %c0_14 = arith.constant 0 : index
    %15 = vector.load %arg6[%c0_13, %c0_14] : memref<1x1xf32, #tpu.memory_space<vmem>>, vector<1x1xf32>
    %16 = vector.broadcast %15 : vector<1x1xf32> to vector<32x1xf32>
    %17 = arith.addf %14, %16 : vector<32x1xf32>
    %c0_15 = arith.constant 0 : index
    %c0_16 = arith.constant 0 : index
    %18 = vector.load %arg8[%c0_15, %c0_16] : memref<32x1xf32, #tpu.memory_space<vmem>>, vector<32x1xf32>
    tpu.vector_store %arg8[%c0_15, %c0_16], %17 {strides = array<i32>} : memref<32x1xf32, #tpu.memory_space<vmem>>, vector<32x1xf32>,
    return
  }
  func.func @transform_0(%arg0: i32) -> (i32, i32) {
    %c0_i32 = arith.constant 0 : i32
    %c0_i32_0 = arith.constant 0 : i32
    return %arg0, %c0_i32 : i32, i32
  }
  func.func @transform_1(%arg0: i32) -> (i32, i32) {
    %c0_i32 = arith.constant 0 : i32
    %c0_i32_0 = arith.constant 0 : i32
    %c0_i32_1 = arith.constant 0 : i32
    return %c0_i32, %c0_i32_0 : i32, i32
  }
  func.func @transform_2(%arg0: i32) -> (i32, i32) {
    %c0_i32 = arith.constant 0 : i32
    %c0_i32_0 = arith.constant 0 : i32
    %c0_i32_1 = arith.constant 0 : i32
    return %c0_i32, %c0_i32_0 : i32, i32
  }
  func.func @transform_3(%arg0: i32) -> (i32, i32) {
    %c0_i32 = arith.constant 0 : i32
    %c0_i32_0 = arith.constant 0 : i32
    %c0_i32_1 = arith.constant 0 : i32
    return %c0_i32, %c0_i32_0 : i32, i32
  }
  func.func @transform_4(%arg0: i32) -> (i32, i32) {
    %c0_i32 = arith.constant 0 : i32
    %c0_i32_0 = arith.constant 0 : i32
    %c0_i32_1 = arith.constant 0 : i32
    return %c0_i32, %c0_i32_0 : i32, i32
  }
  func.func @transform_5(%arg0: i32) -> (i32, i32) {
    %c0_i32 = arith.constant 0 : i32
    %c0_i32_0 = arith.constant 0 : i32
    %c0_i32_1 = arith.constant 0 : i32
    return %c0_i32, %c0_i32_0 : i32, i32
  }
  func.func @transform_6(%arg0: i32) -> (i32, i32) {
    %c0_i32 = arith.constant 0 : i32
    %c0_i32_0 = arith.constant 0 : i32
    return %arg0, %c0_i32 : i32, i32
  }
  func.func @transform_7(%arg0: i32) -> (i32, i32) {
    %c0_i32 = arith.constant 0 : i32
    %c0_i32_0 = arith.constant 0 : i32
    return %arg0, %c0_i32 : i32, i32
  }
}

module attributes {stable_mosaic.version = 11 : i64} {
  func.func @_tail_kernel(%arg0: memref<64x32xf32, #tpu.memory_space<vmem>>, %arg1: memref<64x1xf32, #tpu.memory_space<vmem>>, %arg2: memref<5x32x32xbf16, #tpu.memory_space<vmem>>, %arg3: memref<1x32xf32, #tpu.memory_space<vmem>>, %arg4: memref<5x32x32xbf16, #tpu.memory_space<vmem>>, %arg5: memref<1x32xf32, #tpu.memory_space<vmem>>, %arg6: memref<32x32xbf16, #tpu.memory_space<vmem>>, %arg7: memref<32x32xbf16, #tpu.memory_space<vmem>>, %arg8: memref<1x32xf32, #tpu.memory_space<vmem>>, %arg9: memref<64x32xf32, #tpu.memory_space<vmem>>, %arg10: memref<80x32xf32, #tpu.memory_space<vmem>>) attributes {dimension_semantics = [], scalar_prefetch = 0 : i64, scratch_operands = 1 : i64, tpu.core_type = #tpu.core_type<tc>} {
    %c0 = arith.constant 0 : index
    %c0_0 = arith.constant 0 : index
    %0 = vector.load %arg0[%c0, %c0_0] : memref<64x32xf32, #tpu.memory_space<vmem>>, vector<64x32xf32>
    %c0_1 = arith.constant 0 : index
    %c0_2 = arith.constant 0 : index
    %1 = vector.load %arg1[%c0_1, %c0_2] : memref<64x1xf32, #tpu.memory_space<vmem>>, vector<64x1xf32>
    %2 = vector.broadcast %1 : vector<64x1xf32> to vector<64x32xf32>
    %3 = arith.mulf %2, %0 : vector<64x32xf32>
    %cst = arith.constant 0.000000e+00 : f32
    %4 = vector.broadcast %cst : f32 to vector<8x32xf32>
    %c0_3 = arith.constant 0 : index
    %c0_4 = arith.constant 0 : index
    %5 = vector.load %arg10[%c0_3, %c0_4] : memref<80x32xf32, #tpu.memory_space<vmem>>, vector<8x32xf32>
    tpu.vector_store %arg10[%c0_3, %c0_4], %4 {strides = array<i32>} : memref<80x32xf32, #tpu.memory_space<vmem>>, vector<8x32xf32>,
    %cst_5 = arith.constant 0.000000e+00 : f32
    %6 = vector.broadcast %cst_5 : f32 to vector<8x32xf32>
    %c72 = arith.constant 72 : index
    %c0_6 = arith.constant 0 : index
    %7 = vector.load %arg10[%c72, %c0_6] : memref<80x32xf32, #tpu.memory_space<vmem>>, vector<8x32xf32>
    tpu.vector_store %arg10[%c72, %c0_6], %6 {strides = array<i32>} : memref<80x32xf32, #tpu.memory_space<vmem>>, vector<8x32xf32>,
    %c8 = arith.constant 8 : index
    %c0_7 = arith.constant 0 : index
    %8 = vector.load %arg10[%c8, %c0_7] : memref<80x32xf32, #tpu.memory_space<vmem>>, vector<64x32xf32>
    tpu.vector_store %arg10[%c8, %c0_7], %3 {strides = array<i32>} : memref<80x32xf32, #tpu.memory_space<vmem>>, vector<64x32xf32>,
    %cst_8 = arith.constant 0.000000e+00 : f32
    %9 = vector.broadcast %cst_8 : f32 to vector<64x32xf32>
    %c6 = arith.constant 6 : index
    %c0_9 = arith.constant 0 : index
    %10 = vector.load %arg10[%c6, %c0_9] : memref<80x32xf32, #tpu.memory_space<vmem>>, vector<64x32xf32>
    %11 = arith.truncf %10 : vector<64x32xf32> to vector<64x32xbf16>
    %c0_10 = arith.constant 0 : index
    %c0_11 = arith.constant 0 : index
    %c0_12 = arith.constant 0 : index
    %12 = vector.load %arg2[%c0_10, %c0_11, %c0_12] : memref<5x32x32xbf16, #tpu.memory_space<vmem>>, vector<1x32x32xbf16>
    %13 = vector.shape_cast %12 : vector<1x32x32xbf16> to vector<32x32xbf16>
    %cst_13 = arith.constant dense<0.000000e+00> : vector<64x32xf32>
    %14 = tpu.matmul %11, %13, %cst_13 {dimension_numbers = #tpu.dot_dimension_numbers<[1], [0], [0], [1], [0, 0, 1, 1], [], []>} : vector<64x32xbf16>, vector<32x32xbf16>, vector<64x32xf32> -> vector<64x32xf32>
    %15 = arith.addf %9, %14 : vector<64x32xf32>
    %c7 = arith.constant 7 : index
    %c0_14 = arith.constant 0 : index
    %16 = vector.load %arg10[%c7, %c0_14] : memref<80x32xf32, #tpu.memory_space<vmem>>, vector<64x32xf32>
    %17 = arith.truncf %16 : vector<64x32xf32> to vector<64x32xbf16>
    %c1 = arith.constant 1 : index
    %c0_15 = arith.constant 0 : index
    %c0_16 = arith.constant 0 : index
    %18 = vector.load %arg2[%c1, %c0_15, %c0_16] : memref<5x32x32xbf16, #tpu.memory_space<vmem>>, vector<1x32x32xbf16>
    %19 = vector.shape_cast %18 : vector<1x32x32xbf16> to vector<32x32xbf16>
    %cst_17 = arith.constant dense<0.000000e+00> : vector<64x32xf32>
    %20 = tpu.matmul %17, %19, %cst_17 {dimension_numbers = #tpu.dot_dimension_numbers<[1], [0], [0], [1], [0, 0, 1, 1], [], []>} : vector<64x32xbf16>, vector<32x32xbf16>, vector<64x32xf32> -> vector<64x32xf32>
    %21 = arith.addf %15, %20 : vector<64x32xf32>
    %c8_18 = arith.constant 8 : index
    %c0_19 = arith.constant 0 : index
    %22 = vector.load %arg10[%c8_18, %c0_19] : memref<80x32xf32, #tpu.memory_space<vmem>>, vector<64x32xf32>
    %23 = arith.truncf %22 : vector<64x32xf32> to vector<64x32xbf16>
    %c2 = arith.constant 2 : index
    %c0_20 = arith.constant 0 : index
    %c0_21 = arith.constant 0 : index
    %24 = vector.load %arg2[%c2, %c0_20, %c0_21] : memref<5x32x32xbf16, #tpu.memory_space<vmem>>, vector<1x32x32xbf16>
    %25 = vector.shape_cast %24 : vector<1x32x32xbf16> to vector<32x32xbf16>
    %cst_22 = arith.constant dense<0.000000e+00> : vector<64x32xf32>
    %26 = tpu.matmul %23, %25, %cst_22 {dimension_numbers = #tpu.dot_dimension_numbers<[1], [0], [0], [1], [0, 0, 1, 1], [], []>} : vector<64x32xbf16>, vector<32x32xbf16>, vector<64x32xf32> -> vector<64x32xf32>
    %27 = arith.addf %21, %26 : vector<64x32xf32>
    %c9 = arith.constant 9 : index
    %c0_23 = arith.constant 0 : index
    %28 = vector.load %arg10[%c9, %c0_23] : memref<80x32xf32, #tpu.memory_space<vmem>>, vector<64x32xf32>
    %29 = arith.truncf %28 : vector<64x32xf32> to vector<64x32xbf16>
    %c3 = arith.constant 3 : index
    %c0_24 = arith.constant 0 : index
    %c0_25 = arith.constant 0 : index
    %30 = vector.load %arg2[%c3, %c0_24, %c0_25] : memref<5x32x32xbf16, #tpu.memory_space<vmem>>, vector<1x32x32xbf16>
    %31 = vector.shape_cast %30 : vector<1x32x32xbf16> to vector<32x32xbf16>
    %cst_26 = arith.constant dense<0.000000e+00> : vector<64x32xf32>
    %32 = tpu.matmul %29, %31, %cst_26 {dimension_numbers = #tpu.dot_dimension_numbers<[1], [0], [0], [1], [0, 0, 1, 1], [], []>} : vector<64x32xbf16>, vector<32x32xbf16>, vector<64x32xf32> -> vector<64x32xf32>
    %33 = arith.addf %27, %32 : vector<64x32xf32>
    %c10 = arith.constant 10 : index
    %c0_27 = arith.constant 0 : index
    %34 = vector.load %arg10[%c10, %c0_27] : memref<80x32xf32, #tpu.memory_space<vmem>>, vector<64x32xf32>
    %35 = arith.truncf %34 : vector<64x32xf32> to vector<64x32xbf16>
    %c4 = arith.constant 4 : index
    %c0_28 = arith.constant 0 : index
    %c0_29 = arith.constant 0 : index
    %36 = vector.load %arg2[%c4, %c0_28, %c0_29] : memref<5x32x32xbf16, #tpu.memory_space<vmem>>, vector<1x32x32xbf16>
    %37 = vector.shape_cast %36 : vector<1x32x32xbf16> to vector<32x32xbf16>
    %cst_30 = arith.constant dense<0.000000e+00> : vector<64x32xf32>
    %38 = tpu.matmul %35, %37, %cst_30 {dimension_numbers = #tpu.dot_dimension_numbers<[1], [0], [0], [1], [0, 0, 1, 1], [], []>} : vector<64x32xbf16>, vector<32x32xbf16>, vector<64x32xf32> -> vector<64x32xf32>
    %39 = arith.addf %33, %38 : vector<64x32xf32>
    %c0_31 = arith.constant 0 : index
    %c0_32 = arith.constant 0 : index
    %40 = vector.load %arg3[%c0_31, %c0_32] : memref<1x32xf32, #tpu.memory_space<vmem>>, vector<1x32xf32>
    %41 = vector.broadcast %40 : vector<1x32xf32> to vector<64x32xf32>
    %42 = arith.addf %39, %41 : vector<64x32xf32>
    %cst_33 = arith.constant 0.000000e+00 : f32
    %43 = vector.broadcast %cst_33 : f32 to vector<64x32xf32>
    %44 = arith.maximumf %42, %43 : vector<64x32xf32>
    %c8_34 = arith.constant 8 : index
    %c0_35 = arith.constant 0 : index
    %45 = vector.load %arg10[%c8_34, %c0_35] : memref<80x32xf32, #tpu.memory_space<vmem>>, vector<64x32xf32>
    tpu.vector_store %arg10[%c8_34, %c0_35], %44 {strides = array<i32>} : memref<80x32xf32, #tpu.memory_space<vmem>>, vector<64x32xf32>,
    %cst_36 = arith.constant 0.000000e+00 : f32
    %46 = vector.broadcast %cst_36 : f32 to vector<64x32xf32>
    %c6_37 = arith.constant 6 : index
    %c0_38 = arith.constant 0 : index
    %47 = vector.load %arg10[%c6_37, %c0_38] : memref<80x32xf32, #tpu.memory_space<vmem>>, vector<64x32xf32>
    %48 = arith.truncf %47 : vector<64x32xf32> to vector<64x32xbf16>
    %c0_39 = arith.constant 0 : index
    %c0_40 = arith.constant 0 : index
    %c0_41 = arith.constant 0 : index
    %49 = vector.load %arg4[%c0_39, %c0_40, %c0_41] : memref<5x32x32xbf16, #tpu.memory_space<vmem>>, vector<1x32x32xbf16>
    %50 = vector.shape_cast %49 : vector<1x32x32xbf16> to vector<32x32xbf16>
    %cst_42 = arith.constant dense<0.000000e+00> : vector<64x32xf32>
    %51 = tpu.matmul %48, %50, %cst_42 {dimension_numbers = #tpu.dot_dimension_numbers<[1], [0], [0], [1], [0, 0, 1, 1], [], []>} : vector<64x32xbf16>, vector<32x32xbf16>, vector<64x32xf32> -> vector<64x32xf32>
    %52 = arith.addf %46, %51 : vector<64x32xf32>
    %c7_43 = arith.constant 7 : index
    %c0_44 = arith.constant 0 : index
    %53 = vector.load %arg10[%c7_43, %c0_44] : memref<80x32xf32, #tpu.memory_space<vmem>>, vector<64x32xf32>
    %54 = arith.truncf %53 : vector<64x32xf32> to vector<64x32xbf16>
    %c1_45 = arith.constant 1 : index
    %c0_46 = arith.constant 0 : index
    %c0_47 = arith.constant 0 : index
    %55 = vector.load %arg4[%c1_45, %c0_46, %c0_47] : memref<5x32x32xbf16, #tpu.memory_space<vmem>>, vector<1x32x32xbf16>
    %56 = vector.shape_cast %55 : vector<1x32x32xbf16> to vector<32x32xbf16>
    %cst_48 = arith.constant dense<0.000000e+00> : vector<64x32xf32>
    %57 = tpu.matmul %54, %56, %cst_48 {dimension_numbers = #tpu.dot_dimension_numbers<[1], [0], [0], [1], [0, 0, 1, 1], [], []>} : vector<64x32xbf16>, vector<32x32xbf16>, vector<64x32xf32> -> vector<64x32xf32>
    %58 = arith.addf %52, %57 : vector<64x32xf32>
    %c8_49 = arith.constant 8 : index
    %c0_50 = arith.constant 0 : index
    %59 = vector.load %arg10[%c8_49, %c0_50] : memref<80x32xf32, #tpu.memory_space<vmem>>, vector<64x32xf32>
    %60 = arith.truncf %59 : vector<64x32xf32> to vector<64x32xbf16>
    %c2_51 = arith.constant 2 : index
    %c0_52 = arith.constant 0 : index
    %c0_53 = arith.constant 0 : index
    %61 = vector.load %arg4[%c2_51, %c0_52, %c0_53] : memref<5x32x32xbf16, #tpu.memory_space<vmem>>, vector<1x32x32xbf16>
    %62 = vector.shape_cast %61 : vector<1x32x32xbf16> to vector<32x32xbf16>
    %cst_54 = arith.constant dense<0.000000e+00> : vector<64x32xf32>
    %63 = tpu.matmul %60, %62, %cst_54 {dimension_numbers = #tpu.dot_dimension_numbers<[1], [0], [0], [1], [0, 0, 1, 1], [], []>} : vector<64x32xbf16>, vector<32x32xbf16>, vector<64x32xf32> -> vector<64x32xf32>
    %64 = arith.addf %58, %63 : vector<64x32xf32>
    %c9_55 = arith.constant 9 : index
    %c0_56 = arith.constant 0 : index
    %65 = vector.load %arg10[%c9_55, %c0_56] : memref<80x32xf32, #tpu.memory_space<vmem>>, vector<64x32xf32>
    %66 = arith.truncf %65 : vector<64x32xf32> to vector<64x32xbf16>
    %c3_57 = arith.constant 3 : index
    %c0_58 = arith.constant 0 : index
    %c0_59 = arith.constant 0 : index
    %67 = vector.load %arg4[%c3_57, %c0_58, %c0_59] : memref<5x32x32xbf16, #tpu.memory_space<vmem>>, vector<1x32x32xbf16>
    %68 = vector.shape_cast %67 : vector<1x32x32xbf16> to vector<32x32xbf16>
    %cst_60 = arith.constant dense<0.000000e+00> : vector<64x32xf32>
    %69 = tpu.matmul %66, %68, %cst_60 {dimension_numbers = #tpu.dot_dimension_numbers<[1], [0], [0], [1], [0, 0, 1, 1], [], []>} : vector<64x32xbf16>, vector<32x32xbf16>, vector<64x32xf32> -> vector<64x32xf32>
    %70 = arith.addf %64, %69 : vector<64x32xf32>
    %c10_61 = arith.constant 10 : index
    %c0_62 = arith.constant 0 : index
    %71 = vector.load %arg10[%c10_61, %c0_62] : memref<80x32xf32, #tpu.memory_space<vmem>>, vector<64x32xf32>
    %72 = arith.truncf %71 : vector<64x32xf32> to vector<64x32xbf16>
    %c4_63 = arith.constant 4 : index
    %c0_64 = arith.constant 0 : index
    %c0_65 = arith.constant 0 : index
    %73 = vector.load %arg4[%c4_63, %c0_64, %c0_65] : memref<5x32x32xbf16, #tpu.memory_space<vmem>>, vector<1x32x32xbf16>
    %74 = vector.shape_cast %73 : vector<1x32x32xbf16> to vector<32x32xbf16>
    %cst_66 = arith.constant dense<0.000000e+00> : vector<64x32xf32>
    %75 = tpu.matmul %72, %74, %cst_66 {dimension_numbers = #tpu.dot_dimension_numbers<[1], [0], [0], [1], [0, 0, 1, 1], [], []>} : vector<64x32xbf16>, vector<32x32xbf16>, vector<64x32xf32> -> vector<64x32xf32>
    %76 = arith.addf %70, %75 : vector<64x32xf32>
    %c0_67 = arith.constant 0 : index
    %c0_68 = arith.constant 0 : index
    %77 = vector.load %arg5[%c0_67, %c0_68] : memref<1x32xf32, #tpu.memory_space<vmem>>, vector<1x32xf32>
    %78 = vector.broadcast %77 : vector<1x32xf32> to vector<64x32xf32>
    %79 = arith.addf %76, %78 : vector<64x32xf32>
    %80 = arith.truncf %0 : vector<64x32xf32> to vector<64x32xbf16>
    %c0_69 = arith.constant 0 : index
    %c0_70 = arith.constant 0 : index
    %81 = vector.load %arg6[%c0_69, %c0_70] : memref<32x32xbf16, #tpu.memory_space<vmem>>, vector<32x32xbf16>
    %cst_71 = arith.constant dense<0.000000e+00> : vector<64x32xf32>
    %82 = tpu.matmul %80, %81, %cst_71 {dimension_numbers = #tpu.dot_dimension_numbers<[1], [0], [0], [1], [0, 0, 1, 1], [], []>} : vector<64x32xbf16>, vector<32x32xbf16>, vector<64x32xf32> -> vector<64x32xf32>
    %83 = arith.truncf %79 : vector<64x32xf32> to vector<64x32xbf16>
    %c0_72 = arith.constant 0 : index
    %c0_73 = arith.constant 0 : index
    %84 = vector.load %arg7[%c0_72, %c0_73] : memref<32x32xbf16, #tpu.memory_space<vmem>>, vector<32x32xbf16>
    %cst_74 = arith.constant dense<0.000000e+00> : vector<64x32xf32>
    %85 = tpu.matmul %83, %84, %cst_74 {dimension_numbers = #tpu.dot_dimension_numbers<[1], [0], [0], [1], [0, 0, 1, 1], [], []>} : vector<64x32xbf16>, vector<32x32xbf16>, vector<64x32xf32> -> vector<64x32xf32>
    %86 = arith.addf %82, %85 : vector<64x32xf32>
    %c0_75 = arith.constant 0 : index
    %c0_76 = arith.constant 0 : index
    %87 = vector.load %arg8[%c0_75, %c0_76] : memref<1x32xf32, #tpu.memory_space<vmem>>, vector<1x32xf32>
    %88 = vector.broadcast %87 : vector<1x32xf32> to vector<64x32xf32>
    %89 = arith.addf %86, %88 : vector<64x32xf32>
    %c0_77 = arith.constant 0 : index
    %c0_78 = arith.constant 0 : index
    %90 = vector.load %arg9[%c0_77, %c0_78] : memref<64x32xf32, #tpu.memory_space<vmem>>, vector<64x32xf32>
    tpu.vector_store %arg9[%c0_77, %c0_78], %89 {strides = array<i32>} : memref<64x32xf32, #tpu.memory_space<vmem>>, vector<64x32xf32>,
    return
  }
}

</mosaic_0001>

<bundles_post_ra>
// kernel: nlgnn2_forward.6
= control target key start
LH: loop header
LB: loop body
LE: loop exit
PB: predicated region body
PF: predicated region fallthrough
CT: control target
= control target key end

     0   :  { %s768_s26 = smov 0   ;;  %s834_s0 = inlined_call_operand.vmem [shape: bf16[64,64], index: 0, kind: input, shape index: {}]   ;;  %s835_s1 = inlined_call_operand.vmem [shape: bf16[64,32], index: 1, kind: input, shape index: {}]   ;;  %s836_s2 = inlined_call_operand.vmem [shape: bf16[32,32], index: 2, kind: input, shape index: {}]   ;;  %s837_s3 = inlined_call_operand.vmem [shape: f32[1,32], index: 3, kind: input, shape index: {}]   ;;  %s838_s4 = inlined_call_operand.vmem [shape: f32[1,32], index: 4, kind: input, shape index: {}]   ;;  %s839_s5 = inlined_call_operand.<no memory space> [shape: f32[1,1], index: 5, kind: input, shape index: {}]   ;;  %s840_s6 = inlined_call_operand.vmem [shape: f32[64,32], index: 6, kind: output, shape index: {0}]   ;;  %s841_s7 = inlined_call_operand.vmem [shape: f32[64,1], index: 7, kind: output, shape index: {1}]  }
   0x1   :  { %v13_v0 = vstv %s839_s5 }
   0x2   :  { %14 = vst [vmem:[#allocation2] sm:$0x1] %v13_v0 }
   0x3 LB: > { %s635_s27 = sadd.s32 4294967295, %s723_s26   ;;  %p639_p0 = scmp.ge.s32.totalorder %s723_s26, 1  ;;  %s723_s26 = sphi %s768_s26, %s20_s26  }
   0x4   : > { %p243_p1 = scmp.lt.s32.totalorder %s723_s26, 3 }
   0x6   : > { %p244_p2 = pnand %p639_p0, %p243_p1 }
   0x7   : > { %s640_s16 = sshll.u32 (!%p244_p2), %s635_s27, 2 }
   0x8   : > { %247 = sbr.rel (%p244_p2) target bundleno = 590 (0x24e), region = 44  ;;  %p281_p3 = scmp.lt.s32.totalorder (!%p244_p2), %s640_s16, 7 }
   0xd   : > { %v709_v1 = vld [vmem:[%s836_s2 + $0x8] sm:$0xff]   ;;  %v710_v2 = vld [vmem:[%s836_s2] sm:$0xff]   ;;  %vm347_vm0 = vcmask 261120   ;;  %v713_v5 = vld [vmem:[%s835_s1 + $0x10] sm:$0xff]   ;;  %s843_s16 = smov (!%p281_p3, %s640_s16), 7  ;;  %vm446_vm1 = vcmask 523264  }
   0xe   : > { %677 = vmatprep.subr.bf16.mxu0 %v709_v1  ;;  %v711_v3 = vld [vmem:[%s835_s1] sm:$0xff]   ;;  %v712_v4 = vld [vmem:[%s835_s1 + $0x8] sm:$0xff]   ;;  %v714_v6 = vld [vmem:[%s835_s1 + $0x18] sm:$0xff]   ;;  %s641_s17 = sshll.u32 %s843_s16, 2  ;;  %s643_s23 = sshll.u32 %s843_s16, 3  ;;  %vm540_vm2 = vcmask 7168  }
   0xf   : > { %678 = vmatpush3.bf16.msra.mxu0 %v709_v1  ;;  %681 = vmatprep.mubr.msk.bf16.mxu0 %vm347_vm0, %v711_v3  ;;  %s284_s20 = scalar_lea.vmem %s834_s0, %s641_s17  ;;  %v656_v21 = vld [vmem:[%s837_s3] ss:$0 sm:$0xff]  ;;  %s290_s29 = scalar_lea.vmem %s840_s6, %s643_s23 }
  0x10   : > { %679 = vmatprep.subr.bf16.mxu0 %v710_v2  ;;  %v715_v7 = vld [vmem:[%s284_s20] sm:$0xff]   ;;  %v716_v20 = vld [vmem:[%s284_s20 + $0x8] sm:$0xff]   ;;  %s296_s8 = scalar_lea.vmem %s841_s7, %s643_s23 }
  0x11   : > { %697 = vmatprep.mubr.msk.bf16.mxu1 %vm446_vm1, %v715_v7  ;;  %v661_v23 = vld [vmem:[%s838_s4] ss:$0 sm:$0xff] }
  0x12   : > { %v662_v40 = vld [vmem:[#allocation2] ss:$0 sm:$0xff] }
  0x13   : > { %680 = vmatpush3.bf16.msra.mxu0 %v710_v2 }
  0x16   : > { %682 = vmatmul.mubr.msk.bf16.vlgmr.msra.gmra.mxu0 %vm347_vm0, %v712_v4 }
  0x17   : > { %685 = vmatprep.mubr.msk.bf16.mxu0 %vm347_vm0, %v713_v5 }
  0x1e   : > { %686 = vmatmul.mubr.msk.bf16.gmra.mxu0 %vm347_vm0, %v714_v6 }
  0xd6   : > { %v683_v8 = vpop.f32.mrf.mxu0 }
  0xd8   : > { %v394_v9 = vpop.f32.mrf.mxu0 }
  0xda   : > { %v684_v10 = vpop.f32.mrf.mxu0 }
  0xdb   : > { %v426_v18 = vpack.c.bf16 %v684_v10, %v683_v8 }
  0xdc   : > { %v397_v11 = vpop.f32.mrf.mxu0 }
  0xdd   : > { %v425_v19 = vpack.c.bf16 %v397_v11, %v394_v9 }
  0xde   : > { %v687_v12 = vpop.f32.mrf.mxu0 }
  0xe0   : > { %v410_v13 = vpop.f32.mrf.mxu0 }
  0xe2   : > { %v688_v14 = vpop.f32.mrf.mxu0 }
  0xe3   : > { %v428_v15 = vpack.c.bf16 %v688_v14, %v687_v12 }
  0xe4   : > { %v413_v16 = vpop.f32.mrf.mxu0 }
  0xe5   : > { %v427_v17 = vpack.c.bf16 %v413_v16, %v410_v13  ;;  %689 = vmatprep.subr.bf16.mxu1 %v428_v15 }
  0xe6   : > { %690 = vmatpush3.bf16.msra.mxu1 %v428_v15 }
  0xe7   : > { %691 = vmatprep.subr.bf16.mxu1 %v427_v17 }
  0xea   : > { %692 = vmatpush3.bf16.msra.mxu1 %v427_v17 }
  0xeb   : > { %693 = vmatprep.subr.bf16.mxu1 %v426_v18 }
  0xee   : > { %694 = vmatpush3.bf16.msra.mxu1 %v426_v18 }
  0xef   : > { %695 = vmatprep.subr.bf16.mxu1 %v425_v19 }
  0xf2   : > { %696 = vmatpush3.bf16.msra.mxu1 %v425_v19 }
  0xf5   : > { %698 = vmatmul.mubr.msk.bf16.vlgmr.msra.gmra.mxu1 %vm446_vm1, %v716_v20 }
 0x1b5   : > { %v699_v22 = vpop.f32.mrf.mxu1 }
 0x1b6   : > { %v496_v24 = vadd.f32 %v699_v22, %v656_v21 }
 0x1b7   : > { %v487_v25 = vpop.f32.mrf.mxu1 }
 0x1b8   : > { %v488_v26 = vadd.f32 %v656_v21, %v487_v25  ;;  %v515_v27 = vmul.f32 %v661_v23, %v496_v24  ;;  %504 = vst.msk [vmem:[%s290_s29 + $0x10] sm:$0xff] %vm347_vm0, %v496_v24 }
 0x1b9   : > { %v700_v28 = vpop.f32.mrf.mxu1 }
 0x1ba   : > { %502 = vst.msk [vmem:[%s290_s29] sm:$0xff] %vm347_vm0, %v488_v26  ;;  %v499_v29 = vadd.f32 %v700_v28, %v656_v21  ;;  %v523_v30 = vsel %vm347_vm0, %v515_v27, 0.0  ;;  %v513_v31 = vmul.f32 %v661_v23, %v488_v26 }
 0x1bb   : > { %524 = vadd.xlane.f32.xlu1 %v523_v30  ;;  %v490_v32 = vpop.f32.mrf.mxu1 }
 0x1bc   : > { %v491_v33 = vadd.f32 %v656_v21, %v490_v32  ;;  %v517_v34 = vsel %vm347_vm0, %v513_v31, 0.0  ;;  %v516_v35 = vmul.f32 %v661_v23, %v499_v29  ;;  %505 = vst.msk [vmem:[%s290_s29 + $0x18] sm:$0xff] %vm347_vm0, %v499_v29 }
 0x1bd   : > { %518 = vadd.xlane.f32.xlu0 %v517_v34 }
 0x1be   : > { %503 = vst.msk [vmem:[%s290_s29 + $0x8] sm:$0xff] %vm347_vm0, %v491_v33  ;;  %v526_v36 = vsel %vm347_vm0, %v516_v35, 0.0  ;;  %v514_v37 = vmul.f32 %v661_v23, %v491_v33 }
 0x1bf   : > { %527 = vadd.xlane.f32.xlu1 %v526_v36 }
 0x1c0   : > { %v520_v38 = vsel %vm347_vm0, %v514_v37, 0.0 }
 0x1c1   : > { %521 = vadd.xlane.f32.xlu0 %v520_v38 }
 0x244   : > { %v525_v39 = vpop.xlane.xlu1 %524 }
 0x245   : > { %v538_v46 = vadd.f32 %v662_v40, %v525_v39 }
 0x246   : > { %v519_v41 = vpop.xlane.xlu0 %518 }
 0x247   : > { %v536_v42 = vadd.f32 %v662_v40, %v519_v41  ;;  %543 = vst.msk [vmem:[%s296_s8 + $0x10] sm:$0xff] %vm540_vm2, %v538_v46 }
 0x248   : > { %v528_v43 = vpop.xlane.xlu1 %527 }
 0x249   : > { %541 = vst.msk [vmem:[%s296_s8] sm:$0xff] %vm540_vm2, %v536_v42  ;;  %v539_v47 = vadd.f32 %v662_v40, %v528_v43 }
 0x24a   : > { %v522_v44 = vpop.xlane.xlu0 %521 }
 0x24b   : > { %v537_v45 = vadd.f32 %v662_v40, %v522_v44  ;;  %544 = vst.msk [vmem:[%s296_s8 + $0x18] sm:$0xff] %vm540_vm2, %v539_v47 }
 0x24d   : > { %542 = vst.msk [vmem:[%s296_s8 + $0x8] sm:$0xff] %vm540_vm2, %v537_v45 }
 0x24e PF: > { %s20_s26 = sadd.s32 1, %s723_s26  }
 0x24f   : > { %p17_p4 = scmp.ge.s32.totalorder %s20_s26, 4  }
 0x251   :  { %19 = sbr.rel (!%p17_p4) target bundleno = 3 (0x3), region = 86 }

// kernel: nlgnn2_forward.5
= control target key start
LH: loop header
LB: loop body
LE: loop exit
PB: predicated region body
PF: predicated region fallthrough
CT: control target
= control target key end

     0   :  { %s580_s15 = smov 0   ;;  %s632_s0 = inlined_call_operand.vmem [shape: bf16[64,64], index: 0, kind: input, shape index: {}]   ;;  %s633_s1 = inlined_call_operand.vmem [shape: bf16[64,32], index: 1, kind: input, shape index: {}]   ;;  %s634_s2 = inlined_call_operand.vmem [shape: bf16[32,32], index: 2, kind: input, shape index: {}]   ;;  %s635_s3 = inlined_call_operand.vmem [shape: f32[1,32], index: 3, kind: input, shape index: {}]   ;;  %s636_s4 = inlined_call_operand.vmem [shape: f32[64,32], index: 4, kind: output, shape index: {}]  }
   0x1 LB: > { %s469_s16 = sadd.s32 4294967295, %s553_s15   ;;  %p473_p0 = scmp.ge.s32.totalorder %s553_s15, 1  ;;  %s553_s15 = sphi %s580_s15, %s14_s15  }
   0x2   : > { %p163_p1 = scmp.lt.s32.totalorder %s553_s15, 3 }
   0x4   : > { %p164_p2 = pnand %p473_p0, %p163_p1 }
   0x5   : > { %s474_s29 = sshll.u32 (!%p164_p2), %s469_s16, 2 }
   0x6   : > { %167 = sbr.rel (%p164_p2) target bundleno = 447 (0x1bf), region = 36  ;;  %p190_p3 = scmp.lt.s32.totalorder (!%p164_p2), %s474_s29, 7 }
   0xb   : > { %v539_v0 = vld [vmem:[%s634_s2 + $0x8] sm:$0xff]   ;;  %v540_v1 = vld [vmem:[%s634_s2] sm:$0xff]   ;;  %vm250_vm0 = vcmask 261120   ;;  %v543_v4 = vld [vmem:[%s633_s1 + $0x10] sm:$0xff]   ;;  %s638_s29 = smov (!%p190_p3, %s474_s29), 7  ;;  %vm349_vm1 = vcmask 523264  }
   0xc   : > { %507 = vmatprep.subr.bf16.mxu0 %v539_v0  ;;  %v541_v2 = vld [vmem:[%s633_s1] sm:$0xff]   ;;  %v542_v3 = vld [vmem:[%s633_s1 + $0x8] sm:$0xff]   ;;  %v544_v5 = vld [vmem:[%s633_s1 + $0x18] sm:$0xff]   ;;  %s475_s30 = sshll.u32 %s638_s29, 2  ;;  %s477_s8 = sshll.u32 %s638_s29, 3 }
   0xd   : > { %508 = vmatpush3.bf16.msra.mxu0 %v539_v0  ;;  %511 = vmatprep.mubr.msk.bf16.mxu0 %vm250_vm0, %v541_v2  ;;  %s193_s7 = scalar_lea.vmem %s632_s0, %s475_s30  ;;  %v488_v21 = vld [vmem:[%s635_s3] ss:$0 sm:$0xff]  ;;  %s199_s13 = scalar_lea.vmem %s636_s4, %s477_s8 }
   0xe   : > { %509 = vmatprep.subr.bf16.mxu0 %v540_v1  ;;  %v545_v6 = vld [vmem:[%s193_s7] sm:$0xff]   ;;  %v546_v19 = vld [vmem:[%s193_s7 + $0x8] sm:$0xff]  }
   0xf   : > { %527 = vmatprep.mubr.msk.bf16.mxu1 %vm349_vm1, %v545_v6 }
  0x11   : > { %510 = vmatpush3.bf16.msra.mxu0 %v540_v1 }
  0x14   : > { %512 = vmatmul.mubr.msk.bf16.vlgmr.msra.gmra.mxu0 %vm250_vm0, %v542_v3 }
  0x15   : > { %515 = vmatprep.mubr.msk.bf16.mxu0 %vm250_vm0, %v543_v4 }
  0x1c   : > { %516 = vmatmul.mubr.msk.bf16.gmra.mxu0 %vm250_vm0, %v544_v5 }
  0xd4   : > { %v513_v7 = vpop.f32.mrf.mxu0 }
  0xd6   : > { %v297_v8 = vpop.f32.mrf.mxu0 }
  0xd8   : > { %v514_v9 = vpop.f32.mrf.mxu0 }
  0xd9   : > { %v329_v17 = vpack.c.bf16 %v514_v9, %v513_v7 }
  0xda   : > { %v300_v10 = vpop.f32.mrf.mxu0 }
  0xdb   : > { %v328_v18 = vpack.c.bf16 %v300_v10, %v297_v8 }
  0xdc   : > { %v517_v11 = vpop.f32.mrf.mxu0 }
  0xde   : > { %v313_v12 = vpop.f32.mrf.mxu0 }
  0xe0   : > { %v518_v13 = vpop.f32.mrf.mxu0 }
  0xe1   : > { %v331_v14 = vpack.c.bf16 %v518_v13, %v517_v11 }
  0xe2   : > { %v316_v15 = vpop.f32.mrf.mxu0 }
  0xe3   : > { %v330_v16 = vpack.c.bf16 %v316_v15, %v313_v12  ;;  %519 = vmatprep.subr.bf16.mxu1 %v331_v14 }
  0xe4   : > { %520 = vmatpush3.bf16.msra.mxu1 %v331_v14 }
  0xe5   : > { %521 = vmatprep.subr.bf16.mxu1 %v330_v16 }
  0xe8   : > { %522 = vmatpush3.bf16.msra.mxu1 %v330_v16 }
  0xe9   : > { %523 = vmatprep.subr.bf16.mxu1 %v329_v17 }
  0xec   : > { %524 = vmatpush3.bf16.msra.mxu1 %v329_v17 }
  0xed   : > { %525 = vmatprep.subr.bf16.mxu1 %v328_v18 }
  0xf0   : > { %526 = vmatpush3.bf16.msra.mxu1 %v328_v18 }
  0xf3   : > { %528 = vmatmul.mubr.msk.bf16.vlgmr.msra.gmra.mxu1 %vm349_vm1, %v546_v19 }
 0x1b3   : > { %v529_v20 = vpop.f32.mrf.mxu1 }
 0x1b4   : > { %v399_v26 = vadd.f32 %v529_v20, %v488_v21 }
 0x1b5   : > { %v390_v22 = vpop.f32.mrf.mxu1 }
 0x1b6   : > { %v391_v23 = vadd.f32 %v488_v21, %v390_v22  ;;  %v407_v31 = vmax.f32 %v399_v26, 0.0 }
 0x1b7   : > { %v530_v24 = vpop.f32.mrf.mxu1 }
 0x1b8   : > { %v405_v25 = vmax.f32 %v391_v23, 0.0  ;;  %v402_v28 = vadd.f32 %v530_v24, %v488_v21  ;;  %411 = vst.msk [vmem:[%s199_s13 + $0x10] sm:$0xff] %vm250_vm0, %v407_v31 }
 0x1b9   : > { %v393_v27 = vpop.f32.mrf.mxu1 }
 0x1ba   : > { %409 = vst.msk [vmem:[%s199_s13] sm:$0xff] %vm250_vm0, %v405_v25  ;;  %v394_v29 = vadd.f32 %v488_v21, %v393_v27  ;;  %v408_v32 = vmax.f32 %v402_v28, 0.0 }
 0x1bc   : > { %v406_v30 = vmax.f32 %v394_v29, 0.0  ;;  %412 = vst.msk [vmem:[%s199_s13 + $0x18] sm:$0xff] %vm250_vm0, %v408_v32 }
 0x1be   : > { %410 = vst.msk [vmem:[%s199_s13 + $0x8] sm:$0xff] %vm250_vm0, %v406_v30 }
 0x1bf PF: > { %s14_s15 = sadd.s32 1, %s553_s15  }
 0x1c0   : > { %p11_p4 = scmp.ge.s32.totalorder %s14_s15, 4  }
 0x1c2   :  { %13 = sbr.rel (!%p11_p4) target bundleno = 1 (0x1), region = 66 }

// kernel: nlgnn2_forward.4
= control target key start
LH: loop header
LB: loop body
LE: loop exit
PB: predicated region body
PF: predicated region fallthrough
CT: control target
= control target key end

     0   :  { %s540_s15 = smov 0   ;;  %s579_s0 = inlined_call_operand.vmem [shape: bf16[64,64], index: 0, kind: input, shape index: {}]   ;;  %s580_s1 = inlined_call_operand.vmem [shape: bf16[64,16], index: 1, kind: input, shape index: {}]   ;;  %s581_s2 = inlined_call_operand.vmem [shape: bf16[16,32], index: 2, kind: input, shape index: {}]   ;;  %s582_s3 = inlined_call_operand.vmem [shape: f32[1,32], index: 3, kind: input, shape index: {}]   ;;  %s583_s4 = inlined_call_operand.vmem [shape: f32[64,32], index: 4, kind: output, shape index: {}]  }
   0x1 LB: > { %s442_s16 = sadd.s32 4294967295, %s513_s15   ;;  %p446_p0 = scmp.ge.s32.totalorder %s513_s15, 1  ;;  %s513_s15 = sphi %s540_s15, %s14_s15  }
   0x2   : > { %p163_p1 = scmp.lt.s32.totalorder %s513_s15, 3 }
   0x4   : > { %p164_p2 = pnand %p446_p0, %p163_p1 }
   0x5   : > { %s447_s19 = sshll.u32 (!%p164_p2), %s442_s16, 2 }
   0x6   : > { %167 = sbr.rel (%p164_p2) target bundleno = 434 (0x1b2), region = 36  ;;  %p190_p3 = scmp.lt.s32.totalorder (!%p164_p2), %s447_s19, 7 }
   0xb   : > { %v500_v0 = vld [vmem:[%s580_s1 + $0x18] sm:$0xff]   ;;  %v501_v1 = vld [vmem:[%s580_s1 + $0x10] sm:$0xff]   ;;  %s585_s19 = smov (!%p190_p3, %s447_s19), 7  ;;  %v502_v2 = vld [vmem:[%s580_s1 + $0x8] sm:$0xff]   ;;  %vm250_vm0 = vcmask 523264   ;;  %vm321_vm1 = vcmask 130048  }
   0xc   : > { %474 = vmatprep.subr.bf16.mxu0 %v500_v0  ;;  %s448_s24 = sshll.u32 %s585_s19, 2  ;;  %v503_v4 = vld [vmem:[%s580_s1] sm:$0xff]   ;;  %s450_s6 = sshll.u32 %s585_s19, 3  ;;  %vm381_vm2 = vcmask 261120  }
   0xd   : > { %475 = vmatpush3.bf16.msra.mxu0 %v500_v0  ;;  %s193_s27 = scalar_lea.vmem %s579_s0, %s448_s24  ;;  %v506_v6 = vld [vmem:[%s581_s2] sm:$0xff]   ;;  %s199_s11 = scalar_lea.vmem %s583_s4, %s450_s6 }
   0xe   : > { %476 = vmatprep.subr.bf16.mxu0 %v501_v1  ;;  %v504_v3 = vld [vmem:[%s193_s27] sm:$0xff]   ;;  %v505_v5 = vld [vmem:[%s193_s27 + $0x8] sm:$0xff]   ;;  %486 = vmatprep.subr.bf16.mxu1 %v506_v6 }
   0xf   : > { %482 = vmatprep.mubr.msk.bf16.mxu0 %vm250_vm0, %v504_v3  ;;  %487 = vmatpush3.bf16.msra.mxu1 %v506_v6  ;;  %v459_v14 = vld [vmem:[%s582_s3] ss:$0 sm:$0xff] }
  0x11   : > { %477 = vmatpush3.bf16.msra.mxu0 %v501_v1 }
  0x12   : > { %478 = vmatprep.subr.bf16.mxu0 %v502_v2 }
  0x15   : > { %479 = vmatpush3.bf16.msra.mxu0 %v502_v2 }
  0x16   : > { %480 = vmatprep.subr.bf16.mxu0 %v503_v4 }
  0x19   : > { %481 = vmatpush3.bf16.msra.mxu0 %v503_v4 }
  0x1c   : > { %483 = vmatmul.mubr.msk.bf16.vlgmr.msra.gmra.mxu0 %vm250_vm0, %v505_v5 }
  0xdc   : > { %v484_v7 = vpop.f32.mrf.mxu0 }
  0xde   : > { %v291_v8 = vpop.f32.mrf.mxu0 }
  0xe0   : > { %v485_v9 = vpop.f32.mrf.mxu0 }
  0xe1   : > { %v307_v12 = vpack.c.bf16 %v485_v9, %v484_v7 }
  0xe2   : > { %v294_v10 = vpop.f32.mrf.mxu0 }
  0xe3   : > { %v306_v11 = vpack.c.bf16 %v294_v10, %v291_v8 }
  0xe5   : > { %488 = vmatprep.mubr.msk.bf16.mxu1 %vm321_vm1, %v306_v11 }
  0xe6   : > { %489 = vmatmul.mubr.msk.bf16.vlgmr.msra.gmra.mxu1 %vm321_vm1, %v307_v12 }
 0x1a6   : > { %v490_v13 = vpop.f32.mrf.mxu1 }
 0x1a7   : > { %v371_v19 = vadd.f32 %v490_v13, %v459_v14 }
 0x1a8   : > { %v362_v15 = vpop.f32.mrf.mxu1 }
 0x1a9   : > { %v363_v16 = vadd.f32 %v459_v14, %v362_v15  ;;  %v379_v24 = vmax.f32 %v371_v19, 0.0 }
 0x1aa   : > { %v491_v17 = vpop.f32.mrf.mxu1 }
 0x1ab   : > { %v377_v18 = vmax.f32 %v363_v16, 0.0  ;;  %v374_v21 = vadd.f32 %v491_v17, %v459_v14  ;;  %384 = vst.msk [vmem:[%s199_s11 + $0x10] sm:$0xff] %vm381_vm2, %v379_v24 }
 0x1ac   : > { %v365_v20 = vpop.f32.mrf.mxu1 }
 0x1ad   : > { %382 = vst.msk [vmem:[%s199_s11] sm:$0xff] %vm381_vm2, %v377_v18  ;;  %v366_v22 = vadd.f32 %v459_v14, %v365_v20  ;;  %v380_v25 = vmax.f32 %v374_v21, 0.0 }
 0x1af   : > { %v378_v23 = vmax.f32 %v366_v22, 0.0  ;;  %385 = vst.msk [vmem:[%s199_s11 + $0x18] sm:$0xff] %vm381_vm2, %v380_v25 }
 0x1b1   : > { %383 = vst.msk [vmem:[%s199_s11 + $0x8] sm:$0xff] %vm381_vm2, %v378_v23 }
 0x1b2 PF: > { %s14_s15 = sadd.s32 1, %s513_s15  }
 0x1b3   : > { %p11_p4 = scmp.ge.s32.totalorder %s14_s15, 4  }
 0x1b5   :  { %13 = sbr.rel (!%p11_p4) target bundleno = 1 (0x1), region = 66 }

// kernel: nlgnn2_forward.7
= control target key start
LH: loop header
LB: loop body
LE: loop exit
PB: predicated region body
PF: predicated region fallthrough
CT: control target
= control target key end

     0   :  { %vm97_vm0 = vcmask 261120   ;;  %v1832_v0 = vmov 0   ;;  %v1833_v3 = vmov 0.0   ;;  %s2151_s1 = inlined_call_operand.vmem [shape: f32[64,1], index: 1, kind: input, shape index: {}]   ;;  %s2152_s2 = inlined_call_operand.vmem [shape: bf16[5,32,32], index: 2, kind: input, shape index: {}]   ;;  %s2153_s0 = inlined_call_operand.vmem [shape: f32[64,32], index: 0, kind: input, shape index: {}]   ;;  %s2154_s4 = inlined_call_operand.vmem [shape: bf16[5,32,32], index: 4, kind: input, shape index: {}]   ;;  %s2155_s3 = inlined_call_operand.vmem [shape: f32[1,32], index: 3, kind: input, shape index: {}]   ;;  %s2156_s7 = inlined_call_operand.vmem [shape: bf16[32,32], index: 7, kind: input, shape index: {}]   ;;  %s2157_s6 = inlined_call_operand.vmem [shape: bf16[32,32], index: 6, kind: input, shape index: {}]   ;;  %s2158_s5 = inlined_call_operand.vmem [shape: f32[1,32], index: 5, kind: input, shape index: {}]   ;;  %s2159_s8 = inlined_call_operand.vmem [shape: f32[1,32], index: 8, kind: input, shape index: {}]   ;;  %s2160_s9 = inlined_call_operand.vmem [shape: f32[64,32], index: 9, kind: output, shape index: {}]  }
   0x1   :  { %1807 = vset.pattern.permute.xlu1 %v1832_v0  ;;  %1806 = vset.pattern.permute.xlu0 %v1832_v0  ;;  %v43_v1 = vld [vmem:[%s2151_s1 + $0x10] sm:$0xff]  ;;  %v41_v2 = vld [vmem:[%s2151_s1] sm:$0xff]  ;;  %98 = vst.msk [vmem:[#allocation2] sm:$0xff] %vm97_vm0, %v1833_v3  ;;  %99 = vst.msk [vmem:[#allocation2 + $0x48] sm:$0xff] %vm97_vm0, %v1833_v3 }
   0x2   :  { %61 = vperm.xlu1 %1807, %v43_v1   ;;  %51 = vperm.xlu0 %1806, %v41_v2   ;;  %v44_v4 = vld [vmem:[%s2151_s1 + $0x18] sm:$0xff]  ;;  %v42_v5 = vld [vmem:[%s2151_s1 + $0x8] sm:$0xff]  ;;  %v45_v7 = vld [vmem:[%s2151_s1 + $0x20] sm:$0xff] }
   0x3   :  { %v46_v6 = vld [vmem:[%s2151_s1 + $0x28] sm:$0xff]  ;;  %v1808_v8 = vld [vmem:[%s2152_s2 + $0x18] sm:$0xff]   ;;  %v47_v11 = vld [vmem:[%s2151_s1 + $0x30] sm:$0xff] }
   0x4   :  { %v1809_v9 = vld [vmem:[%s2152_s2 + $0x8] sm:$0xff]   ;;  %1660 = vmatprep.subr.bf16.mxu0 %v1808_v8  ;;  %v48_v10 = vld [vmem:[%s2151_s1 + $0x38] sm:$0xff]  ;;  %v1810_v12 = vld [vmem:[%s2152_s2 + $0x10] sm:$0xff]  }
   0x5   :  { %1661 = vmatpush3.bf16.msra.mxu0 %v1808_v8  ;;  %1672 = vmatprep.subr.bf16.mxu1 %v1809_v9  ;;  %v1811_v13 = vld [vmem:[%s2152_s2] sm:$0xff]   ;;  %v1812_v14 = vld [vmem:[%s2152_s2 + $0x28] sm:$0xff]   ;;  %v1814_v15 = vld [vmem:[%s2152_s2 + $0x38] sm:$0xff]  }
   0x6   :  { %66 = vperm.xlu1 %1807, %v44_v4   ;;  %56 = vperm.xlu0 %1806, %v42_v5   ;;  %v1931_v16 = vld [vmem:[%s2153_s0 + $0x10] sm:$0xff]  ;;  %v1936_v17 = vld [vmem:[%s2153_s0] sm:$0xff]  ;;  %v1943_v22 = vld [vmem:[%s2153_s0 + $0x18] sm:$0xff] }
   0x7   :  { %1673 = vmatpush3.bf16.msra.mxu1 %v1809_v9  ;;  %1662 = vmatprep.subr.bf16.mxu0 %v1810_v12  ;;  %v1948_v23 = vld [vmem:[%s2153_s0 + $0x8] sm:$0xff]  ;;  %v1962_v29 = vld [vmem:[%s2153_s0 + $0x20] sm:$0xff]  ;;  %v1971_v34 = vld [vmem:[%s2153_s0 + $0x38] sm:$0xff] }
   0x8   :  { %1674 = vmatprep.subr.bf16.mxu1 %v1811_v13  ;;  %v1957_v28 = vld [vmem:[%s2153_s0 + $0x28] sm:$0xff]  ;;  %v1976_v35 = vld [vmem:[%s2153_s0 + $0x30] sm:$0xff]  ;;  %v1813_v52 = vld [vmem:[%s2152_s2 + $0x20] sm:$0xff]  }
   0x9   :  { %1663 = vmatpush3.bf16.msra.mxu0 %v1810_v12  ;;  %v1815_v53 = vld [vmem:[%s2152_s2 + $0x30] sm:$0xff]   ;;  %v1816_v60 = vld [vmem:[%s2152_s2 + $0x48] sm:$0xff]  }
   0xa   :  { %76 = vperm.xlu1 %1807, %v46_v6   ;;  %71 = vperm.xlu0 %1806, %v45_v7  }
   0xb   :  { %1675 = vmatpush3.bf16.msra.mxu1 %v1811_v13  ;;  %1684 = vmatprep.subr.bf16.mxu0 %v1812_v14 }
   0xc   :  { %1696 = vmatprep.subr.bf16.mxu1 %v1814_v15 }
   0xe   :  { %86 = vperm.xlu1 %1807, %v48_v10   ;;  %81 = vperm.xlu0 %1806, %v47_v11  }
  0x7d   :  { %v62_v18 = vpop.permute.xlu1 %61  ;;  %v52_v19 = vpop.permute.xlu0 %51 }
  0x7e   :  { %v91_v20 = vmul.f32 %v62_v18, %v1931_v16  ;;  %v89_v21 = vmul.f32 %v52_v19, %v1936_v17 }
  0x80   :  { %102 = vst.msk [vmem:[#allocation2 + $0x18] sm:$0xff] %vm97_vm0, %v91_v20  ;;  %100 = vst.msk [vmem:[#allocation2 + $0x8] sm:$0xff] %vm97_vm0, %v89_v21  ;;  %v1817_v20 = vld [vmem:[%s2152_s2 + $0x40] sm:$0xff]  }
  0x81   :  { %v67_v24 = vpop.permute.xlu1 %66  ;;  %v57_v25 = vpop.permute.xlu0 %56 }
  0x82   :  { %v92_v26 = vmul.f32 %v67_v24, %v1943_v22  ;;  %v90_v27 = vmul.f32 %v57_v25, %v1948_v23 }
  0x84   :  { %103 = vst.msk [vmem:[#allocation2 + $0x20] sm:$0xff] %vm97_vm0, %v92_v26  ;;  %101 = vst.msk [vmem:[#allocation2 + $0x10] sm:$0xff] %vm97_vm0, %v90_v27 }
  0x85   :  { %v77_v30 = vpop.permute.xlu1 %76  ;;  %v72_v31 = vpop.permute.xlu0 %71 }
  0x86   :  { %v94_v32 = vmul.f32 %v77_v30, %v1957_v28  ;;  %v93_v33 = vmul.f32 %v72_v31, %v1962_v29 }
  0x87   :  { %v124_v40 = vld [vmem:[#allocation2 + $0x7] sm:$0xff]  ;;  %v321_v13 = vld [vmem:[#allocation2 + $0x18] sm:$0xff] }
  0x88   :  { %105 = vst.msk [vmem:[#allocation2 + $0x30] sm:$0xff] %vm97_vm0, %v94_v32  ;;  %104 = vst.msk [vmem:[#allocation2 + $0x28] sm:$0xff] %vm97_vm0, %v93_v33  ;;  %v108_v41 = vld [vmem:[#allocation2 + $0x6] sm:$0xff] }
  0x89   :  { %v87_v36 = vpop.permute.xlu1 %86  ;;  %v82_v37 = vpop.permute.xlu0 %81  ;;  %v319_v6 = vld [vmem:[#allocation2 + $0x8] sm:$0xff] }
  0x8a   :  { %v96_v38 = vmul.f32 %v87_v36, %v1971_v34  ;;  %v95_v39 = vmul.f32 %v82_v37, %v1976_v35 }
  0x8b   :  { %v125_v42 = vld [vmem:[#allocation2 + $0xf] sm:$0xff]  ;;  %v126_v44 = vld [vmem:[#allocation2 + $0x17] sm:$0xff]  ;;  %v127_v47 = vld [vmem:[#allocation2 + $0x1f] sm:$0xff] }
  0x8c   :  { %v109_v43 = vld [vmem:[#allocation2 + $0xe] sm:$0xff]  ;;  %107 = vst.msk [vmem:[#allocation2 + $0x40] sm:$0xff] %vm97_vm0, %v96_v38  ;;  %106 = vst.msk [vmem:[#allocation2 + $0x38] sm:$0xff] %vm97_vm0, %v95_v39  ;;  %v132_v45 = vpack.c.bf16 %v125_v42, %v124_v40  ;;  %v110_v48 = vld [vmem:[#allocation2 + $0x16] sm:$0xff]  ;;  %v133_v50 = vpack.c.bf16 %v127_v47, %v126_v44 }
  0x8d   :  { %v116_v46 = vpack.c.bf16 %v109_v43, %v108_v41  ;;  %v111_v49 = vld [vmem:[#allocation2 + $0x1e] sm:$0xff]  ;;  %v320_v61 = vld [vmem:[#allocation2 + $0x10] sm:$0xff] }
  0x8e   :  { %v117_v51 = vpack.c.bf16 %v111_v49, %v110_v48  ;;  %1664 = vmatprep.mubr.msk.bf16.mxu0 %vm97_vm0, %v132_v45  ;;  %v433_v62 = vld [vmem:[#allocation2 + $0x9] sm:$0xff]  ;;  %v434_v63 = vld [vmem:[#allocation2 + $0x11] sm:$0xff]  ;;  %v327_v7 = vpack.c.bf16 %v320_v61, %v319_v6  ;;  %v322_v9 = vld [vmem:[#allocation2 + $0x20] sm:$0xff] }
  0x8f   :  { %1676 = vmatprep.mubr.msk.bf16.mxu1 %vm97_vm0, %v116_v46  ;;  %1665 = vmatmul.mubr.msk.bf16.vlgmr.msra.gmra.mxu0 %vm97_vm0, %v133_v50  ;;  %v128_v54 = vld [vmem:[#allocation2 + $0x27] sm:$0xff]  ;;  %v129_v55 = vld [vmem:[#allocation2 + $0x2f] sm:$0xff]  ;;  %v441_v8 = vpack.c.bf16 %v434_v63, %v433_v62  ;;  %v328_v18 = vpack.c.bf16 %v322_v9, %v321_v13  ;;  %v549_v41 = vld [vmem:[#allocation2 + $0x1a] sm:$0xff] }
  0x90   :  { %1677 = vmatmul.mubr.msk.bf16.vlgmr.msra.gmra.mxu1 %vm97_vm0, %v117_v51  ;;  %v112_v56 = vld [vmem:[#allocation2 + $0x26] sm:$0xff]  ;;  %1685 = vmatpush3.bf16.msra.mxu0 %v1812_v14  ;;  %v134_v57 = vpack.c.bf16 %v129_v55, %v128_v54  ;;  %v113_v58 = vld [vmem:[#allocation2 + $0x2e] sm:$0xff]  ;;  %v435_v14 = vld [vmem:[#allocation2 + $0x19] sm:$0xff] }
  0x91   :  { %1697 = vmatpush3.bf16.msra.mxu1 %v1814_v15  ;;  %v118_v59 = vpack.c.bf16 %v113_v58, %v112_v56  ;;  %1686 = vmatprep.subr.bf16.mxu0 %v1813_v52  ;;  %v436_v10 = vld [vmem:[#allocation2 + $0x21] sm:$0xff]  ;;  %v324_v12 = vld [vmem:[#allocation2 + $0x30] sm:$0xff]  ;;  %v1818_v48 = vld [vmem:[%s2154_s4 + $0x18] sm:$0xff]  }
  0x92   :  { %1698 = vmatprep.subr.bf16.mxu1 %v1815_v53  ;;  %1668 = vmatprep.mubr.msk.bf16.mxu0 %vm97_vm0, %v134_v57  ;;  %v323_v11 = vld [vmem:[#allocation2 + $0x28] sm:$0xff]  ;;  %v442_v19 = vpack.c.bf16 %v436_v10, %v435_v14  ;;  %v548_v33 = vld [vmem:[#allocation2 + $0x12] sm:$0xff]  ;;  %v1821_v51 = vld [vmem:[%s2154_s4] sm:$0xff]  }
  0x93   :  { %1680 = vmatprep.mubr.msk.bf16.mxu1 %vm97_vm0, %v118_v59  ;;  %v130_v0 = vld [vmem:[#allocation2 + $0x37] sm:$0xff]  ;;  %v131_v1 = vld [vmem:[#allocation2 + $0x3f] sm:$0xff]  ;;  %v329_v21 = vpack.c.bf16 %v324_v12, %v323_v11  ;;  %v437_v24 = vld [vmem:[#allocation2 + $0x29] sm:$0xff] }
  0x94   :  { %v114_v2 = vld [vmem:[#allocation2 + $0x36] sm:$0xff]  ;;  %v135_v3 = vpack.c.bf16 %v131_v1, %v130_v0  ;;  %v115_v4 = vld [vmem:[#allocation2 + $0x3e] sm:$0xff]  ;;  %1687 = vmatpush3.bf16.msra.mxu0 %v1813_v52  ;;  %v547_v32 = vld [vmem:[#allocation2 + $0xa] sm:$0xff] }
  0x95   :  { %1699 = vmatpush3.bf16.msra.mxu1 %v1815_v53  ;;  %v119_v5 = vpack.c.bf16 %v115_v4, %v114_v2  ;;  %1708 = vmatprep.subr.bf16.mxu0 %v1816_v60  ;;  %v438_v15 = vld [vmem:[#allocation2 + $0x31] sm:$0xff]  ;;  %v326_v27 = vld [vmem:[#allocation2 + $0x40] sm:$0xff]  ;;  %v555_v38 = vpack.c.bf16 %v548_v33, %v547_v32  ;;  %v1820_v50 = vld [vmem:[%s2154_s4 + $0x8] sm:$0xff]  }
  0x96   :  { %v443_v25 = vpack.c.bf16 %v438_v15, %v437_v24  ;;  %v325_v26 = vld [vmem:[#allocation2 + $0x38] sm:$0xff]  ;;  %v440_v31 = vld [vmem:[#allocation2 + $0x41] sm:$0xff]  ;;  %v551_v43 = vld [vmem:[#allocation2 + $0x2a] sm:$0xff]  ;;  %1720 = vmatprep.subr.bf16.mxu1 %v1818_v48 }
  0x97   :  { %1669 = vmatmul.mubr.msk.bf16.gmra.mxu0 %vm97_vm0, %v135_v3  ;;  %v439_v30 = vld [vmem:[#allocation2 + $0x39] sm:$0xff]  ;;  %v330_v36 = vpack.c.bf16 %v326_v27, %v325_v26  ;;  %v550_v39 = vld [vmem:[#allocation2 + $0x22] sm:$0xff]  ;;  %v1819_v49 = vld [vmem:[%s2154_s4 + $0x10] sm:$0xff]  }
  0x98   :  { %1681 = vmatmul.mubr.msk.bf16.gmra.mxu1 %vm97_vm0, %v119_v5  ;;  %1688 = vmatprep.mubr.msk.bf16.mxu0 %vm97_vm0, %v327_v7  ;;  %v444_v37 = vpack.c.bf16 %v440_v31, %v439_v30  ;;  %v552_v40 = vld [vmem:[#allocation2 + $0x32] sm:$0xff]  ;;  %v556_v42 = vpack.c.bf16 %v550_v39, %v549_v41  ;;  %v553_v45 = vld [vmem:[#allocation2 + $0x3a] sm:$0xff]  ;;  %v554_v46 = vld [vmem:[#allocation2 + $0x42] sm:$0xff] }
  0x99   :  { %1700 = vmatprep.mubr.msk.bf16.mxu1 %vm97_vm0, %v441_v8  ;;  %v557_v44 = vpack.c.bf16 %v552_v40, %v551_v43  ;;  %v558_v47 = vpack.c.bf16 %v554_v46, %v553_v45  ;;  %v2031_v52 = vld [vmem:[%s2154_s4 + $0x28] sm:$0xff]   ;;  %v2037_v53 = vld [vmem:[%s2154_s4 + $0x38] sm:$0xff]  }
  0x9f   :  { %1689 = vmatmul.mubr.msk.bf16.vlgmr.msra.gmra.mxu0 %vm97_vm0, %v328_v18 }
  0xa0   :  { %1701 = vmatmul.mubr.msk.bf16.vlgmr.msra.gmra.mxu1 %vm97_vm0, %v442_v19  ;;  %1709 = vmatpush3.bf16.msra.mxu0 %v1816_v60 }
  0xa1   :  { %1692 = vmatprep.mubr.msk.bf16.mxu0 %vm97_vm0, %v329_v21  ;;  %1704 = vmatprep.mubr.msk.bf16.mxu1 %vm97_vm0, %v443_v25 }
  0xa2   :  { %1710 = vmatprep.subr.bf16.mxu0 %v1817_v20  ;;  %1721 = vmatpush3.bf16.msra.mxu1 %v1818_v48 }
  0xa3   :  { %1722 = vmatprep.subr.bf16.mxu1 %v1819_v49 }
  0xa4   :  { %1711 = vmatpush3.bf16.msra.mxu0 %v1817_v20 }
  0xa5   :  { %1732 = vmatprep.subr.bf16.mxu0 %v1820_v50 }
  0xa6   :  { %1723 = vmatpush3.bf16.msra.mxu1 %v1819_v49 }
  0xa7   :  { %1693 = vmatmul.mubr.msk.bf16.gmra.mxu0 %vm97_vm0, %v330_v36  ;;  %1744 = vmatprep.subr.bf16.mxu1 %v2031_v52 }
  0xa8   :  { %1705 = vmatmul.mubr.msk.bf16.gmra.mxu1 %vm97_vm0, %v444_v37  ;;  %1712 = vmatprep.mubr.msk.bf16.mxu0 %vm97_vm0, %v555_v38  ;;  %v1527_v37 = vld [vmem:[%s2155_s3] ss:$0 sm:$0xff] }
  0xaf   :  { %1713 = vmatmul.mubr.msk.bf16.vlgmr.msra.gmra.mxu0 %vm97_vm0, %v556_v42 }
  0xb0   :  { %1716 = vmatprep.mubr.msk.bf16.mxu0 %vm97_vm0, %v557_v44  ;;  %1733 = vmatpush3.bf16.msra.mxu0 %v1820_v50 }
  0xb1   :  { %1734 = vmatprep.subr.bf16.mxu0 %v1821_v51 }
  0xb4   :  { %1735 = vmatpush3.bf16.msra.mxu0 %v1821_v51 }
  0xb5   :  { %1756 = vmatprep.subr.bf16.mxu0 %v2037_v53 }
  0xb7   :  { %1717 = vmatmul.mubr.msk.bf16.gmra.mxu0 %vm97_vm0, %v558_v47 }
 0x14f   :  { %v1666_v54 = vpop.f32.mrf.mxu0 }
 0x150   :  { %v1678_v55 = vpop.f32.mrf.mxu1 }
 0x151   :  { %v199_v56 = vpop.f32.mrf.mxu0  ;;  %v297_v14 = vadd.f32 %v1678_v55, %v1666_v54 }
 0x152   :  { %v288_v57 = vpop.f32.mrf.mxu1 }
 0x153   :  { %v1667_v58 = vpop.f32.mrf.mxu0  ;;  %v289_v18 = vadd.f32 %v288_v57, %v199_v56 }
 0x154   :  { %v1679_v59 = vpop.f32.mrf.mxu1 }
 0x155   :  { %v202_v60 = vpop.f32.mrf.mxu0  ;;  %v300_v24 = vadd.f32 %v1679_v59, %v1667_v58 }
 0x156   :  { %v291_v61 = vpop.f32.mrf.mxu1 }
 0x157   :  { %v1670_v62 = vpop.f32.mrf.mxu0  ;;  %v292_v27 = vadd.f32 %v291_v61, %v202_v60 }
 0x158   :  { %v1682_v63 = vpop.f32.mrf.mxu1 }
 0x159   :  { %v215_v0 = vpop.f32.mrf.mxu0  ;;  %v313_v32 = vadd.f32 %v1682_v63, %v1670_v62 }
 0x15a   :  { %v304_v1 = vpop.f32.mrf.mxu1 }
 0x15b   :  { %v1671_v2 = vpop.f32.mrf.mxu0  ;;  %v305_v41 = vadd.f32 %v304_v1, %v215_v0 }
 0x15c   :  { %v1683_v3 = vpop.f32.mrf.mxu1 }
 0x15d   :  { %v218_v4 = vpop.f32.mrf.mxu0  ;;  %v316_v47 = vadd.f32 %v1683_v3, %v1671_v2 }
 0x15e   :  { %v307_v5 = vpop.f32.mrf.mxu1 }
 0x15f   :  { %v1690_v6 = vpop.f32.mrf.mxu0  ;;  %v308_v57 = vadd.f32 %v307_v5, %v218_v4 }
 0x160   :  { %v1702_v7 = vpop.f32.mrf.mxu1  ;;  %v427_v19 = vadd.f32 %v1690_v6, %v297_v14 }
 0x161   :  { %v394_v8 = vpop.f32.mrf.mxu0 }
 0x162   :  { %v508_v9 = vpop.f32.mrf.mxu1  ;;  %v425_v25 = vadd.f32 %v394_v8, %v289_v18  ;;  %v541_v30 = vadd.f32 %v1702_v7, %v427_v19 }
 0x163   :  { %v1691_v10 = vpop.f32.mrf.mxu0 }
 0x164   :  { %v1703_v12 = vpop.f32.mrf.mxu1  ;;  %v428_v31 = vadd.f32 %v1691_v10, %v300_v24  ;;  %v539_v38 = vadd.f32 %v508_v9, %v425_v25 }
 0x165   :  { %v397_v11 = vpop.f32.mrf.mxu0 }
 0x166   :  { %v511_v20 = vpop.f32.mrf.mxu1  ;;  %v426_v39 = vadd.f32 %v397_v11, %v292_v27  ;;  %v542_v44 = vadd.f32 %v1703_v12, %v428_v31 }
 0x167   :  { %v1694_v13 = vpop.f32.mrf.mxu0 }
 0x168   :  { %v1706_v33 = vpop.f32.mrf.mxu1  ;;  %v431_v42 = vadd.f32 %v1694_v13, %v313_v32  ;;  %v540_v51 = vadd.f32 %v511_v20, %v426_v39 }
 0x169   :  { %v410_v15 = vpop.f32.mrf.mxu0 }
 0x16a   :  { %v429_v48 = vadd.f32 %v410_v15, %v305_v41  ;;  %v524_v49 = vpop.f32.mrf.mxu1  ;;  %v545_v58 = vadd.f32 %v1706_v33, %v431_v42 }
 0x16b   :  { %v1695_v21 = vpop.f32.mrf.mxu0 }
 0x16c   :  { %v432_v60 = vadd.f32 %v1695_v21, %v316_v47  ;;  %v543_v0 = vadd.f32 %v524_v49, %v429_v48  ;;  %v1707_v1 = vpop.f32.mrf.mxu1  ;;  %v1826_v47 = vld [vmem:[%s2154_s4 + $0x48] sm:$0xff]  }
 0x16d   :  { %v413_v26 = vpop.f32.mrf.mxu0 }
 0x16e   :  { %v430_v2 = vadd.f32 %v413_v26, %v308_v57  ;;  %v546_v10 = vadd.f32 %v1707_v1, %v432_v60  ;;  %v527_v12 = vpop.f32.mrf.mxu1 }
 0x16f   :  { %v1714_v36 = vpop.f32.mrf.mxu0 }
 0x170   :  { %v655_v40 = vadd.f32 %v1714_v36, %v541_v30  ;;  %v544_v14 = vadd.f32 %v527_v12, %v430_v2  ;;  %v1827_v12 = vld [vmem:[%s2154_s4 + $0x40] sm:$0xff]  }
 0x171   :  { %v622_v43 = vpop.f32.mrf.mxu0 }
 0x172   :  { %v670_v45 = vadd.f32 %v1527_v37, %v655_v40  ;;  %v653_v46 = vadd.f32 %v622_v43, %v539_v38 }
 0x173   :  { %v1715_v50 = vpop.f32.mrf.mxu0 }
 0x174   :  { %v678_v54 = vmax.f32 %v670_v45, 0.0  ;;  %v668_v55 = vadd.f32 %v1527_v37, %v653_v46  ;;  %v656_v56 = vadd.f32 %v1715_v50, %v542_v44  ;;  %v1825_v46 = vld [vmem:[%s2154_s4 + $0x30] sm:$0xff]  }
 0x175   :  { %v625_v59 = vpop.f32.mrf.mxu0 }
 0x176   :  { %686 = vst.msk [vmem:[#allocation2 + $0x18] sm:$0xff] %vm97_vm0, %v678_v54  ;;  %v676_v61 = vmax.f32 %v668_v55, 0.0  ;;  %v671_v62 = vadd.f32 %v1527_v37, %v656_v56  ;;  %v654_v63 = vadd.f32 %v625_v59, %v540_v51 }
 0x177   :  { %v1718_v6 = vpop.f32.mrf.mxu0 }
 0x178   :  { %684 = vst.msk [vmem:[#allocation2 + $0x8] sm:$0xff] %vm97_vm0, %v676_v61  ;;  %v679_v3 = vmax.f32 %v671_v62, 0.0  ;;  %v669_v7 = vadd.f32 %v1527_v37, %v654_v63  ;;  %v659_v8 = vadd.f32 %v1718_v6, %v545_v58 }
 0x179   :  { %v638_v9 = vpop.f32.mrf.mxu0 }
 0x17a   :  { %687 = vst.msk [vmem:[#allocation2 + $0x20] sm:$0xff] %vm97_vm0, %v679_v3  ;;  %v677_v4 = vmax.f32 %v669_v7, 0.0  ;;  %v674_v5 = vadd.f32 %v1527_v37, %v659_v8  ;;  %v657_v11 = vadd.f32 %v638_v9, %v543_v0 }
 0x17b   :  { %v1719_v13 = vpop.f32.mrf.mxu0 }
 0x17c   :  { %685 = vst.msk [vmem:[#allocation2 + $0x10] sm:$0xff] %vm97_vm0, %v677_v4  ;;  %v682_v15 = vmax.f32 %v674_v5, 0.0  ;;  %v672_v18 = vadd.f32 %v1527_v37, %v657_v11  ;;  %v660_v19 = vadd.f32 %v1719_v13, %v546_v10 }
 0x17d   :  { %v641_v20 = vpop.f32.mrf.mxu0  ;;  %v905_v3 = vld [vmem:[#allocation2 + $0x18] sm:$0xff] }
 0x17e   :  { %690 = vst.msk [vmem:[#allocation2 + $0x38] sm:$0xff] %vm97_vm0, %v682_v15  ;;  %v680_v21 = vmax.f32 %v672_v18, 0.0  ;;  %v675_v24 = vadd.f32 %v1527_v37, %v660_v19  ;;  %v658_v25 = vadd.f32 %v641_v20, %v544_v14 }
 0x17f   :  { %v708_v31 = vld [vmem:[#allocation2 + $0x7] sm:$0xff] }
 0x180   :  { %688 = vst.msk [vmem:[#allocation2 + $0x28] sm:$0xff] %vm97_vm0, %v680_v21  ;;  %v683_v26 = vmax.f32 %v675_v24, 0.0  ;;  %v673_v27 = vadd.f32 %v1527_v37, %v658_v25  ;;  %v692_v32 = vld [vmem:[#allocation2 + $0x6] sm:$0xff] }
 0x181   :  { %v711_v33 = vld [vmem:[#allocation2 + $0x1f] sm:$0xff]  ;;  %v903_v63 = vld [vmem:[#allocation2 + $0x8] sm:$0xff] }
 0x182   :  { %691 = vst.msk [vmem:[#allocation2 + $0x40] sm:$0xff] %vm97_vm0, %v683_v26  ;;  %v681_v30 = vmax.f32 %v673_v27, 0.0  ;;  %v695_v44 = vld [vmem:[#allocation2 + $0x1e] sm:$0xff] }
 0x183   :  { %v709_v36 = vld [vmem:[#allocation2 + $0xf] sm:$0xff]  ;;  %v710_v39 = vld [vmem:[#allocation2 + $0x17] sm:$0xff]  ;;  %v1823_v37 = vld [vmem:[%s2154_s4 + $0x20] sm:$0xff]  }
 0x184   :  { %v693_v38 = vld [vmem:[#allocation2 + $0xe] sm:$0xff]  ;;  %689 = vst.msk [vmem:[#allocation2 + $0x30] sm:$0xff] %vm97_vm0, %v681_v30  ;;  %v716_v40 = vpack.c.bf16 %v709_v36, %v708_v31  ;;  %v717_v42 = vpack.c.bf16 %v711_v33, %v710_v39  ;;  %v694_v43 = vld [vmem:[#allocation2 + $0x16] sm:$0xff]  ;;  %v906_v6 = vld [vmem:[#allocation2 + $0x20] sm:$0xff] }
 0x185   :  { %v700_v41 = vpack.c.bf16 %v693_v38, %v692_v32  ;;  %v701_v45 = vpack.c.bf16 %v695_v44, %v694_v43  ;;  %v904_v48 = vld [vmem:[#allocation2 + $0x10] sm:$0xff]  ;;  %v1019_v8 = vld [vmem:[#allocation2 + $0x19] sm:$0xff]  ;;  %v912_v4 = vpack.c.bf16 %v906_v6, %v905_v3  ;;  %v1828_v43 = vld [vmem:[%s2156_s7 + $0x8] sm:$0xff]  }
 0x186   :  { %1724 = vmatprep.mubr.msk.bf16.mxu1 %vm97_vm0, %v716_v40  ;;  %v1017_v49 = vld [vmem:[#allocation2 + $0x9] sm:$0xff]  ;;  %v1018_v50 = vld [vmem:[#allocation2 + $0x11] sm:$0xff]  ;;  %v911_v0 = vpack.c.bf16 %v904_v48, %v903_v63  ;;  %v1133_v33 = vld [vmem:[#allocation2 + $0x1a] sm:$0xff] }
 0x187   :  { %1736 = vmatprep.mubr.msk.bf16.mxu0 %vm97_vm0, %v700_v41  ;;  %1725 = vmatmul.mubr.msk.bf16.vlgmr.msra.gmra.mxu1 %vm97_vm0, %v717_v42  ;;  %v712_v51 = vld [vmem:[#allocation2 + $0x27] sm:$0xff]  ;;  %v1025_v1 = vpack.c.bf16 %v1018_v50, %v1017_v49  ;;  %v1132_v21 = vld [vmem:[#allocation2 + $0x12] sm:$0xff]  ;;  %v1260_v41 = vpack.c.bf16 %v1948_v23, %v1936_v17 }
 0x188   :  { %1737 = vmatmul.mubr.msk.bf16.vlgmr.msra.gmra.mxu0 %vm97_vm0, %v701_v45  ;;  %1745 = vmatpush3.bf16.msra.mxu1 %v2031_v52  ;;  %v696_v54 = vld [vmem:[#allocation2 + $0x26] sm:$0xff]  ;;  %v909_v24 = vld [vmem:[#allocation2 + $0x38] sm:$0xff]  ;;  %v1261_v45 = vpack.c.bf16 %v1943_v22, %v1931_v16 }
 0x189   :  { %1757 = vmatpush3.bf16.msra.mxu0 %v2037_v53  ;;  %1746 = vmatprep.subr.bf16.mxu1 %v1823_v37  ;;  %v715_v55 = vld [vmem:[#allocation2 + $0x3f] sm:$0xff]  ;;  %v907_v11 = vld [vmem:[#allocation2 + $0x28] sm:$0xff] }
 0x18a   :  { %1758 = vmatprep.subr.bf16.mxu0 %v1825_v46  ;;  %v699_v53 = vld [vmem:[#allocation2 + $0x3e] sm:$0xff]  ;;  %v1131_v20 = vld [vmem:[#allocation2 + $0xa] sm:$0xff] }
 0x18b   :  { %v713_v56 = vld [vmem:[#allocation2 + $0x2f] sm:$0xff]  ;;  %v714_v58 = vld [vmem:[#allocation2 + $0x37] sm:$0xff]  ;;  %v1020_v2 = vld [vmem:[#allocation2 + $0x21] sm:$0xff]  ;;  %v1139_v27 = vpack.c.bf16 %v1132_v21, %v1131_v20 }
 0x18c   :  { %v697_v57 = vld [vmem:[#allocation2 + $0x2e] sm:$0xff]  ;;  %v718_v59 = vpack.c.bf16 %v713_v56, %v712_v51  ;;  %v719_v52 = vpack.c.bf16 %v715_v55, %v714_v58  ;;  %v698_v61 = vld [vmem:[#allocation2 + $0x36] sm:$0xff]  ;;  %1747 = vmatpush3.bf16.msra.mxu1 %v1823_v37  ;;  %v1026_v5 = vpack.c.bf16 %v1020_v2, %v1019_v8  ;;  %v910_v15 = vld [vmem:[#allocation2 + $0x40] sm:$0xff]  ;;  %v1262_v37 = vpack.c.bf16 %v1957_v28, %v1962_v29 }
 0x18d   :  { %v702_v60 = vpack.c.bf16 %v697_v57, %v696_v54  ;;  %1759 = vmatpush3.bf16.msra.mxu0 %v1825_v46  ;;  %v703_v62 = vpack.c.bf16 %v699_v53, %v698_v61  ;;  %1768 = vmatprep.subr.bf16.mxu1 %v1826_v47  ;;  %v908_v7 = vld [vmem:[#allocation2 + $0x30] sm:$0xff]  ;;  %v1023_v18 = vld [vmem:[#allocation2 + $0x39] sm:$0xff]  ;;  %v1024_v19 = vld [vmem:[#allocation2 + $0x41] sm:$0xff]  ;;  %v914_v25 = vpack.c.bf16 %v910_v15, %v909_v24 }
 0x18e   :  { %1728 = vmatprep.mubr.msk.bf16.mxu1 %vm97_vm0, %v718_v59  ;;  %v1021_v9 = vld [vmem:[#allocation2 + $0x29] sm:$0xff]  ;;  %v1022_v10 = vld [vmem:[#allocation2 + $0x31] sm:$0xff]  ;;  %v913_v13 = vpack.c.bf16 %v908_v7, %v907_v11  ;;  %v1028_v26 = vpack.c.bf16 %v1024_v19, %v1023_v18  ;;  %v1137_v39 = vld [vmem:[#allocation2 + $0x3a] sm:$0xff]  ;;  %1780 = vmatprep.subr.bf16.mxu0 %v1828_v43  ;;  %v1263_v46 = vpack.c.bf16 %v1971_v34, %v1976_v35 }
 0x18f   :  { %1740 = vmatprep.mubr.msk.bf16.mxu0 %vm97_vm0, %v702_v60  ;;  %1729 = vmatmul.mubr.msk.bf16.gmra.mxu1 %vm97_vm0, %v719_v52  ;;  %v1027_v14 = vpack.c.bf16 %v1022_v10, %v1021_v9  ;;  %v1134_v30 = vld [vmem:[#allocation2 + $0x22] sm:$0xff]  ;;  %v1135_v31 = vld [vmem:[#allocation2 + $0x2a] sm:$0xff]  ;;  %v1136_v32 = vld [vmem:[#allocation2 + $0x32] sm:$0xff] }
 0x190   :  { %1741 = vmatmul.mubr.msk.bf16.gmra.mxu0 %vm97_vm0, %v703_v62  ;;  %1748 = vmatprep.mubr.msk.bf16.mxu1 %vm97_vm0, %v911_v0  ;;  %v1140_v36 = vpack.c.bf16 %v1134_v30, %v1133_v33  ;;  %v1141_v38 = vpack.c.bf16 %v1136_v32, %v1135_v31  ;;  %v1138_v40 = vld [vmem:[#allocation2 + $0x42] sm:$0xff] }
 0x191   :  { %1760 = vmatprep.mubr.msk.bf16.mxu0 %vm97_vm0, %v1025_v1  ;;  %v1142_v42 = vpack.c.bf16 %v1138_v40, %v1137_v39  ;;  %v1829_v44 = vld [vmem:[%s2157_s6 + $0x8] sm:$0xff]   ;;  %v1830_v17 = vld [vmem:[%s2157_s6] sm:$0xff]  }
 0x192   :  { %v1831_v23 = vld [vmem:[%s2156_s7] sm:$0xff]  }
 0x197   :  { %1749 = vmatmul.mubr.msk.bf16.vlgmr.msra.gmra.mxu1 %vm97_vm0, %v912_v4 }
 0x198   :  { %1761 = vmatmul.mubr.msk.bf16.vlgmr.msra.gmra.mxu0 %vm97_vm0, %v1026_v5  ;;  %1769 = vmatpush3.bf16.msra.mxu1 %v1826_v47 }
 0x199   :  { %1752 = vmatprep.mubr.msk.bf16.mxu1 %vm97_vm0, %v913_v13  ;;  %1764 = vmatprep.mubr.msk.bf16.mxu0 %vm97_vm0, %v1027_v14 }
 0x19a   :  { %1770 = vmatprep.subr.bf16.mxu1 %v1827_v12  ;;  %1781 = vmatpush3.bf16.msra.mxu0 %v1828_v43 }
 0x19b   :  { %1782 = vmatprep.subr.bf16.mxu0 %v1831_v23 }
 0x19c   :  { %1771 = vmatpush3.bf16.msra.mxu1 %v1827_v12 }
 0x19d   :  { %1792 = vmatprep.subr.bf16.mxu1 %v1829_v44 }
 0x19e   :  { %1783 = vmatpush3.bf16.msra.mxu0 %v1831_v23 }
 0x19f   :  { %1753 = vmatmul.mubr.msk.bf16.gmra.mxu1 %vm97_vm0, %v914_v25 }
 0x1a0   :  { %1765 = vmatmul.mubr.msk.bf16.gmra.mxu0 %vm97_vm0, %v1028_v26  ;;  %1772 = vmatprep.mubr.msk.bf16.mxu1 %vm97_vm0, %v1139_v27 }
 0x1a7   :  { %1773 = vmatmul.mubr.msk.bf16.vlgmr.msra.gmra.mxu1 %vm97_vm0, %v1140_v36 }
 0x1a8   :  { %1776 = vmatprep.mubr.msk.bf16.mxu1 %vm97_vm0, %v1141_v38  ;;  %1793 = vmatpush3.bf16.msra.mxu1 %v1829_v44 }
 0x1a9   :  { %1794 = vmatprep.subr.bf16.mxu1 %v1830_v17 }
 0x1ac   :  { %1795 = vmatpush3.bf16.msra.mxu1 %v1830_v17 }
 0x1af   :  { %1777 = vmatmul.mubr.msk.bf16.gmra.mxu1 %vm97_vm0, %v1142_v42 }
 0x1b0   :  { %1796 = vmatprep.mubr.msk.bf16.mxu1 %vm97_vm0, %v1260_v41  ;;  %v1574_v41 = vld [vmem:[%s2158_s5] ss:$0 sm:$0xff] }
 0x1b7   :  { %1797 = vmatmul.mubr.msk.bf16.vlgmr.msra.gmra.mxu1 %vm97_vm0, %v1261_v45 }
 0x1b8   :  { %1800 = vmatprep.mubr.msk.bf16.mxu1 %vm97_vm0, %v1262_v37 }
 0x1bf   :  { %1801 = vmatmul.mubr.msk.bf16.gmra.mxu1 %vm97_vm0, %v1263_v46 }
 0x247   :  { %v1726_v47 = vpop.f32.mrf.mxu1 }
 0x248   :  { %v1738_v48 = vpop.f32.mrf.mxu0 }
 0x249   :  { %v783_v49 = vpop.f32.mrf.mxu1  ;;  %v881_v8 = vadd.f32 %v1738_v48, %v1726_v47 }
 0x24a   :  { %v872_v16 = vpop.f32.mrf.mxu0 }
 0x24b   :  { %v1727_v22 = vpop.f32.mrf.mxu1  ;;  %v873_v3 = vadd.f32 %v872_v16, %v783_v49 }
 0x24c   :  { %v1739_v50 = vpop.f32.mrf.mxu0 }
 0x24d   :  { %v786_v51 = vpop.f32.mrf.mxu1  ;;  %v884_v7 = vadd.f32 %v1739_v50, %v1727_v22 }
 0x24e   :  { %v875_v54 = vpop.f32.mrf.mxu0 }
 0x24f   :  { %v1730_v28 = vpop.f32.mrf.mxu1  ;;  %v876_v10 = vadd.f32 %v875_v54, %v786_v51 }
 0x250   :  { %v1742_v29 = vpop.f32.mrf.mxu0 }
 0x251   :  { %v799_v55 = vpop.f32.mrf.mxu1  ;;  %v897_v32 = vadd.f32 %v1742_v29, %v1730_v28 }
 0x252   :  { %v888_v56 = vpop.f32.mrf.mxu0 }
 0x253   :  { %v1731_v57 = vpop.f32.mrf.mxu1  ;;  %v889_v20 = vadd.f32 %v888_v56, %v799_v55 }
 0x254   :  { %v1743_v58 = vpop.f32.mrf.mxu0 }
 0x255   :  { %v802_v59 = vpop.f32.mrf.mxu1  ;;  %v900_v26 = vadd.f32 %v1743_v58, %v1731_v57 }
 0x256   :  { %v891_v60 = vpop.f32.mrf.mxu0 }
 0x257   :  { %v1750_v52 = vpop.f32.mrf.mxu1  ;;  %v892_v38 = vadd.f32 %v891_v60, %v802_v59 }
 0x258   :  { %v1762_v34 = vpop.f32.mrf.mxu0  ;;  %v1011_v11 = vadd.f32 %v1750_v52, %v881_v8 }
 0x259   :  { %v978_v35 = vpop.f32.mrf.mxu1 }
 0x25a   :  { %v1092_v61 = vpop.f32.mrf.mxu0  ;;  %v1009_v4 = vadd.f32 %v978_v35, %v873_v3  ;;  %v1125_v21 = vadd.f32 %v1762_v34, %v1011_v11 }
 0x25b   :  { %v1751_v53 = vpop.f32.mrf.mxu1 }
 0x25c   :  { %v1763_v63 = vpop.f32.mrf.mxu0  ;;  %v1012_v5 = vadd.f32 %v1751_v53, %v884_v7  ;;  %v1123_v18 = vadd.f32 %v1092_v61, %v1009_v4 }
 0x25d   :  { %v981_v62 = vpop.f32.mrf.mxu1 }
 0x25e   :  { %v1095_v6 = vpop.f32.mrf.mxu0  ;;  %v1010_v14 = vadd.f32 %v981_v62, %v876_v10  ;;  %v1126_v19 = vadd.f32 %v1763_v63, %v1012_v5 }
 0x25f   :  { %v1754_v0 = vpop.f32.mrf.mxu1 }
 0x260   :  { %v1766_v12 = vpop.f32.mrf.mxu0  ;;  %v1124_v27 = vadd.f32 %v1095_v6, %v1010_v14  ;;  %v1015_v43 = vadd.f32 %v1754_v0, %v897_v32 }
 0x261   :  { %v994_v1 = vpop.f32.mrf.mxu1 }
 0x262   :  { %v1108_v24 = vpop.f32.mrf.mxu0  ;;  %v1013_v39 = vadd.f32 %v994_v1, %v889_v20  ;;  %v1129_v50 = vadd.f32 %v1766_v12, %v1015_v43 }
 0x263   :  { %v1755_v2 = vpop.f32.mrf.mxu1 }
 0x264   :  { %v1016_v40 = vadd.f32 %v1755_v2, %v900_v26  ;;  %v1767_v44 = vpop.f32.mrf.mxu0  ;;  %v1127_v49 = vadd.f32 %v1108_v24, %v1013_v39  ;;  %v1587_v2 = vld [vmem:[%s2159_s8] ss:$0 sm:$0xff] }
 0x265   :  { %v997_v9 = vpop.f32.mrf.mxu1 }
 0x266   :  { %v1014_v45 = vadd.f32 %v997_v9, %v892_v38  ;;  %v1130_v16 = vadd.f32 %v1767_v44, %v1016_v40  ;;  %v1111_v51 = vpop.f32.mrf.mxu0 }
 0x267   :  { %v1774_v13 = vpop.f32.mrf.mxu1 }
 0x268   :  { %v1239_v33 = vadd.f32 %v1774_v13, %v1125_v21  ;;  %v1128_v29 = vadd.f32 %v1111_v51, %v1014_v45 }
 0x269   :  { %v1206_v15 = vpop.f32.mrf.mxu1 }
 0x26a   :  { %v1237_v30 = vadd.f32 %v1206_v15, %v1123_v18  ;;  %v1254_v47 = vadd.f32 %v1574_v41, %v1239_v33 }
 0x26b   :  { %v1775_v25 = vpop.f32.mrf.mxu1 }
 0x26c   :  { %v1240_v31 = vadd.f32 %v1775_v25, %v1126_v19  ;;  %v1252_v37 = vadd.f32 %v1574_v41, %v1237_v30 }
 0x26d   :  { %v1209_v36 = vpop.f32.mrf.mxu1 }
 0x26e   :  { %v1238_v42 = vadd.f32 %v1209_v36, %v1124_v27  ;;  %v1255_v17 = vadd.f32 %v1574_v41, %v1240_v31 }
 0x26f   :  { %v1778_v23 = vpop.f32.mrf.mxu1 }
 0x270   :  { %v1253_v46 = vadd.f32 %v1574_v41, %v1238_v42  ;;  %v1269_v54 = vpack.c.bf16 %v1255_v17, %v1254_v47  ;;  %v1243_v57 = vadd.f32 %v1778_v23, %v1129_v50 }
 0x271   :  { %v1222_v48 = vpop.f32.mrf.mxu1 }
 0x272   :  { %v1268_v22 = vpack.c.bf16 %v1253_v46, %v1252_v37  ;;  %v1241_v55 = vadd.f32 %v1222_v48, %v1127_v49  ;;  %v1258_v35 = vadd.f32 %v1574_v41, %v1243_v57 }
 0x273   :  { %v1779_v28 = vpop.f32.mrf.mxu1 }
 0x274   :  { %v1244_v56 = vadd.f32 %v1779_v28, %v1130_v16  ;;  %1784 = vmatprep.mubr.msk.bf16.mxu0 %vm97_vm0, %v1268_v22  ;;  %v1256_v52 = vadd.f32 %v1574_v41, %v1241_v55 }
 0x275   :  { %v1225_v58 = vpop.f32.mrf.mxu1  ;;  %1785 = vmatmul.mubr.msk.bf16.vlgmr.msra.gmra.mxu0 %vm97_vm0, %v1269_v54 }
 0x276   :  { %v1242_v59 = vadd.f32 %v1225_v58, %v1128_v29  ;;  %v1259_v60 = vadd.f32 %v1574_v41, %v1244_v56 }
 0x277   :  { %v1798_v62 = vpop.f32.mrf.mxu1 }
 0x278   :  { %v1257_v34 = vadd.f32 %v1574_v41, %v1242_v59  ;;  %v1271_v53 = vpack.c.bf16 %v1259_v60, %v1258_v35 }
 0x279   :  { %v1423_v63 = vpop.f32.mrf.mxu1 }
 0x27a   :  { %v1270_v61 = vpack.c.bf16 %v1257_v34, %v1256_v52 }
 0x27b   :  { %v1799_v0 = vpop.f32.mrf.mxu1 }
 0x27c   :  { %1788 = vmatprep.mubr.msk.bf16.mxu0 %vm97_vm0, %v1270_v61 }
 0x27d   :  { %1789 = vmatmul.mubr.msk.bf16.gmra.mxu0 %vm97_vm0, %v1271_v53  ;;  %v1426_v1 = vpop.f32.mrf.mxu1 }
 0x27f   :  { %v1802_v8 = vpop.f32.mrf.mxu1 }
 0x281   :  { %v1439_v12 = vpop.f32.mrf.mxu1 }
 0x283   :  { %v1803_v21 = vpop.f32.mrf.mxu1 }
 0x285   :  { %v1442_v32 = vpop.f32.mrf.mxu1 }
 0x335   :  { %v1786_v6 = vpop.f32.mrf.mxu0 }
 0x336   :  { %v1432_v3 = vadd.f32 %v1798_v62, %v1786_v6 }
 0x337   :  { %v1334_v7 = vpop.f32.mrf.mxu0 }
 0x338   :  { %v1463_v9 = vadd.f32 %v1587_v2, %v1432_v3  ;;  %v1424_v10 = vadd.f32 %v1423_v63, %v1334_v7 }
 0x339   :  { %v1787_v4 = vpop.f32.mrf.mxu0 }
 0x33a   :  { %1471 = vst.msk [vmem:[%s2160_s9 + $0x10] sm:$0xff] %vm97_vm0, %v1463_v9  ;;  %v1461_v5 = vadd.f32 %v1587_v2, %v1424_v10  ;;  %v1435_v11 = vadd.f32 %v1799_v0, %v1787_v4 }
 0x33b   :  { %v1337_v13 = vpop.f32.mrf.mxu0 }
 0x33c   :  { %1469 = vst.msk [vmem:[%s2160_s9] sm:$0xff] %vm97_vm0, %v1461_v5  ;;  %v1464_v14 = vadd.f32 %v1587_v2, %v1435_v11  ;;  %v1427_v15 = vadd.f32 %v1426_v1, %v1337_v13 }
 0x33d   :  { %v1790_v18 = vpop.f32.mrf.mxu0 }
 0x33e   :  { %1472 = vst.msk [vmem:[%s2160_s9 + $0x18] sm:$0xff] %vm97_vm0, %v1464_v14  ;;  %v1462_v19 = vadd.f32 %v1587_v2, %v1427_v15  ;;  %v1448_v20 = vadd.f32 %v1802_v8, %v1790_v18 }
 0x33f   :  { %v1350_v24 = vpop.f32.mrf.mxu0 }
 0x340   :  { %1470 = vst.msk [vmem:[%s2160_s9 + $0x8] sm:$0xff] %vm97_vm0, %v1462_v19  ;;  %v1467_v25 = vadd.f32 %v1587_v2, %v1448_v20  ;;  %v1440_v26 = vadd.f32 %v1439_v12, %v1350_v24 }
 0x341   :  { %v1791_v27 = vpop.f32.mrf.mxu0 }
 0x342   :  { %1475 = vst.msk [vmem:[%s2160_s9 + $0x30] sm:$0xff] %vm97_vm0, %v1467_v25  ;;  %v1465_v30 = vadd.f32 %v1587_v2, %v1440_v26  ;;  %v1451_v31 = vadd.f32 %v1803_v21, %v1791_v27 }
 0x343   :  { %v1353_v33 = vpop.f32.mrf.mxu0 }
 0x344   :  { %1473 = vst.msk [vmem:[%s2160_s9 + $0x20] sm:$0xff] %vm97_vm0, %v1465_v30  ;;  %v1468_v36 = vadd.f32 %v1587_v2, %v1451_v31  ;;  %v1443_v38 = vadd.f32 %v1442_v32, %v1353_v33 }
 0x346   :  { %1476 = vst.msk [vmem:[%s2160_s9 + $0x38] sm:$0xff] %vm97_vm0, %v1468_v36  ;;  %v1466_v39 = vadd.f32 %v1587_v2, %v1443_v38 }
 0x348   :  { %1474 = vst.msk [vmem:[%s2160_s9 + $0x28] sm:$0xff] %vm97_vm0, %v1466_v39 }

</bundles_post_ra>
